<compile_context>
chip_gen: v7x
topology: tpu7x:2x2x1
jax: 0.10.0
libtpu: 0.0.40
codegen_flags: <defaults>
</compile_context>

<pallas_src>
import functools

import numpy as np
import jax
import jax.numpy as jnp
from jax.experimental import pallas as pl
from jax.experimental.pallas import tpu as pltpu

EPS = 1e-5


# ---------------- fused conv (+BN+ReLU on input, +residual) kernel ----------

def _make_conv_kernel(*, s, kh, kw, ho, wo, cin, cout, fuse_bn_relu, has_res,
                      cdtype):
    """Implicit-GEMM conv over one image (all phases resident in VMEM)."""

    def kernel(*refs):
        it = iter(refs)
        x_ref = next(it)                       # (s*s, hq, wq, cin)
        w_ref = next(it)                       # (kh*kw, cin, cout)
        if fuse_bn_relu:
            scale_ref = next(it)               # (1, cin) f32
            shift_ref = next(it)               # (1, cin) f32
            mask_ref = next(it)                # (s*s, hq, wq, 1) f32
        if has_res:
            r_ref = next(it)                   # (1, ho, wo, cout)
        o_ref = next(it)                       # (1, ho, wo, cout)

        x = x_ref[...]
        if fuse_bn_relu:
            # BN(+ReLU) applied to the A tile in f32, then conv zero-padding
            # restored via the mask (BN would otherwise make pads nonzero).
            xf = x.astype(jnp.float32)
            scale = scale_ref[...].reshape(1, 1, 1, cin)
            shift = shift_ref[...].reshape(1, 1, 1, cin)
            xf = jnp.maximum(xf * scale + shift, 0.0)
            xf = xf * mask_ref[...]
            x = xf.astype(cdtype)

        if has_res:
            acc = r_ref[...].reshape(ho * wo, cout).astype(jnp.float32)
        else:
            acc = jnp.zeros((ho * wo, cout), jnp.float32)

        # kh*kw taps: unit-stride static windows thanks to the phase split.
        for di in range(kh):
            for dj in range(kw):
                ph = (di % s) * s + (dj % s)
                oi, oj = di // s, dj // s
                win = x[ph, oi:oi + ho, oj:oj + wo, :].reshape(ho * wo, cin)
                acc = acc + jnp.dot(win, w_ref[di * kw + dj],
                                    preferred_element_type=jnp.float32)

        o_ref[...] = acc.reshape(1, ho, wo, cout).astype(o_ref.dtype)

    return kernel


def _phase_split(x_nhwc, s, pad, cdtype):
    """Zero-pad spatially and split into s*s stride phases: (N*s*s,hq,wq,C)."""
    n, h, w, c = x_nhwc.shape
    hp, wp = h + 2 * pad, w + 2 * pad
    hq, wq = -(-hp // s), -(-wp // s)
    xp = jnp.pad(x_nhwc.astype(cdtype),
                 ((0, 0),
                  (pad, hq * s - h - pad),
                  (pad, wq * s - w - pad),
                  (0, 0)))
    xr = xp.reshape(n, hq, s, wq, s, c).transpose(0, 2, 4, 1, 3, 5)
    return xr.reshape(n * s * s, hq, wq, c), hq, wq


def _pad_mask(s, pad, h, w, hq, wq):
    """1.0 on valid (non conv-padding) positions in phased coords, else 0."""
    p = np.arange(s).reshape(s, 1, 1, 1)
    q = np.arange(s).reshape(1, s, 1, 1)
    i = np.arange(hq).reshape(1, 1, hq, 1)
    j = np.arange(wq).reshape(1, 1, 1, wq)
    grow = s * i + p
    gcol = s * j + q
    valid = ((grow >= pad) & (grow < h + pad) &
             (gcol >= pad) & (gcol < w + pad))
    valid = np.broadcast_to(valid, (s, s, hq, wq))
    return jnp.asarray(valid.reshape(s * s, hq, wq, 1).astype(np.float32))


def conv2d_fused(x_nhwc, w_oihw, stride, pad, *, bn_scale=None, bn_shift=None,
                 residual=None, compute_dtype=jnp.bfloat16, out_dtype=None):
    """Conv2d (no bias), optionally with fused input-BN+ReLU and residual."""
    out_dtype = out_dtype if out_dtype is not None else x_nhwc.dtype
    cout, cin_w, kh, kw = w_oihw.shape
    s = stride
    if kh == 1 and kw == 1 and pad == 0 and s > 1:
        # 1x1 strided conv reads only one phase: decimate in the wrapper.
        x_nhwc = x_nhwc[:, ::s, ::s, :]
        s = 1
    n, h, w, cin = x_nhwc.shape
    assert cin == cin_w
    ho = (h + 2 * pad - kh) // s + 1
    wo = (w + 2 * pad - kw) // s + 1
    s2 = s * s

    x_ph, hq, wq = _phase_split(x_nhwc, s, pad, compute_dtype)
    wmat = jnp.transpose(w_oihw, (2, 3, 1, 0)).reshape(kh * kw, cin, cout)
    wmat = wmat.astype(compute_dtype)

    fuse = bn_scale is not None
    has_res = residual is not None

    in_specs = [
        pl.BlockSpec((s2, hq, wq, cin), lambda i: (i, 0, 0, 0)),
        pl.BlockSpec((kh * kw, cin, cout), lambda i: (0, 0, 0)),
    ]
    operands = [x_ph, wmat]
    if fuse:
        in_specs += [pl.BlockSpec((1, cin), lambda i: (0, 0)),
                     pl.BlockSpec((1, cin), lambda i: (0, 0)),
                     pl.BlockSpec((s2, hq, wq, 1), lambda i: (0, 0, 0, 0))]
        operands += [bn_scale.reshape(1, cin).astype(jnp.float32),
                     bn_shift.reshape(1, cin).astype(jnp.float32),
                     _pad_mask(s, pad, h, w, hq, wq)]
    if has_res:
        # residual stays in its native dtype; cast to f32 inside the kernel.
        in_specs.append(pl.BlockSpec((1, ho, wo, cout),
                                     lambda i: (i, 0, 0, 0)))
        operands.append(residual)

    kernel = _make_conv_kernel(s=s, kh=kh, kw=kw, ho=ho, wo=wo, cin=cin,
                               cout=cout, fuse_bn_relu=fuse, has_res=has_res,
                               cdtype=compute_dtype)

    # explicit VMEM budget (double-buffered blocks + f32 temporaries); capped
    # below v7x's 64 MiB physical VMEM.
    cbytes = np.dtype(compute_dtype).itemsize
    obytes = np.dtype(out_dtype).itemsize
    x_blk = s2 * hq * wq * cin * cbytes
    w_blk = kh * kw * cin * cout * cbytes
    o_blk = ho * wo * cout * obytes
    r_blk = ho * wo * cout * np.dtype(residual.dtype).itemsize if has_res else 0
    need = (2 * (x_blk + w_blk + o_blk + r_blk)
            + 4 * s2 * hq * wq * cin          # f32 normalized copy
            + 4 * ho * wo * cout              # f32 accumulator
            + 2 * 4 * ho * wo * cin           # window temporaries
            + (4 << 20))                      # headroom
    vmem_limit = int(min(60 << 20, max(32 << 20, need)))

    out = pl.pallas_call(
        kernel,
        out_shape=jax.ShapeDtypeStruct((n, ho, wo, cout), out_dtype),
        grid_spec=pltpu.PrefetchScalarGridSpec(
            num_scalar_prefetch=0,
            grid=(n,),
            in_specs=in_specs,
            out_specs=pl.BlockSpec((1, ho, wo, cout), lambda i: (i, 0, 0, 0))),
        compiler_params=pltpu.CompilerParams(
            dimension_semantics=("parallel",),
            vmem_limit_bytes=vmem_limit),
        cost_estimate=pl.CostEstimate(
            flops=2 * n * ho * wo * cin * cout * kh * kw,
            transcendentals=0,
            bytes_accessed=int(n * (x_blk + o_blk + r_blk) + w_blk)),
    )(*operands)
    return out


# ---------------- BN batch statistics (two-pass, biased) ---------------------

def bn_scale_shift(x_nhwc, gamma, beta):
    """Training-mode BatchNorm2d folded to per-channel scale/shift (f32)."""
    x32 = x_nhwc.astype(jnp.float32)
    mean = jnp.mean(x32, axis=(0, 1, 2))
    var = jnp.mean(jnp.square(x32 - mean), axis=(0, 1, 2))   # two-pass
    inv = gamma / jnp.sqrt(var + EPS)
    return inv, beta - mean * inv


# ---------------- BasicBlock forward -----------------------------------------

def basic_block_forward(x_nchw, params, in_planes, out_planes, stride,
                        compute_dtype=jnp.bfloat16):
    """Pallas implementation of BasicBlock.forward. Input/output are NCHW."""
    x = jnp.transpose(x_nchw, (0, 2, 3, 1))                   # NCHW -> NHWC
    act_dtype = compute_dtype                                 # bf16 intermediates

    s1, b1 = bn_scale_shift(x, params["bn1_gamma"], params["bn1_beta"])
    out1 = conv2d_fused(x, params["conv1_w"], stride, 1,
                        bn_scale=s1, bn_shift=b1,
                        compute_dtype=compute_dtype, out_dtype=act_dtype)

    s2_, b2 = bn_scale_shift(out1, params["bn2_gamma"], params["bn2_beta"])

    if stride != 1 or in_planes != out_planes:
        shortcut = conv2d_fused(x, params["shortcut_w"], stride, 0,
                                compute_dtype=compute_dtype,
                                out_dtype=act_dtype)
    else:
        # Matches the PyTorch module exactly: no shortcut add in this branch.
        shortcut = None

    out = conv2d_fused(out1, params["conv2_w"], 1, 1,
                       bn_scale=s2_, bn_shift=b2, residual=shortcut,
                       compute_dtype=compute_dtype, out_dtype=jnp.float32)
    return jnp.transpose(out, (0, 3, 1, 2))                   # NHWC -> NCHW


# ---------------- pure-JAX reference (sanity check only) ---------------------

def _ref_forward(x, p, in_planes, out_planes, stride):
    def bn(v, g, b):
        mean = v.mean(axis=(0, 2, 3), keepdims=True)
        var = ((v - mean) ** 2).mean(axis=(0, 2, 3), keepdims=True)
        return ((v - mean) / jnp.sqrt(var + EPS) * g[None, :, None, None]
                + b[None, :, None, None])

    def conv(v, w, s, pad):
        return jax.lax.conv_general_dilated(
            v, w, (s, s), [(pad, pad), (pad, pad)],
            dimension_numbers=("NCHW", "OIHW", "NCHW"))

    out = jax.nn.relu(bn(x, p["bn1_gamma"], p["bn1_beta"]))
    out = conv(out, p["conv1_w"], stride, 1)
    out = jax.nn.relu(bn(out, p["bn2_gamma"], p["bn2_beta"]))
    out = conv(out, p["conv2_w"], 1, 1)
    if stride != 1 or in_planes != out_planes:
        out = out + conv(x, p["shortcut_w"], stride, 0)
    return out


if __name__ == "__main__":
    in_planes, out_planes, kernel_size, stride = 4, 8, 3, 2
    N, H, W = 2, 16, 16

    key = jax.random.PRNGKey(0)
    ks = jax.random.split(key, 8)
    params = {
        "bn1_gamma":  jax.random.uniform(ks[0], (in_planes,), jnp.float32, 0.5, 1.5),
        "bn1_beta":   jax.random.normal(ks[1], (in_planes,), jnp.float32) * 0.1,
        "conv1_w":    jax.random.normal(ks[2], (out_planes, in_planes, 3, 3), jnp.float32) * 0.1,
        "bn2_gamma":  jax.random.uniform(ks[3], (out_planes,), jnp.float32, 0.5, 1.5),
        "bn2_beta":   jax.random.normal(ks[4], (out_planes,), jnp.float32) * 0.1,
        "conv2_w":    jax.random.normal(ks[5], (out_planes, out_planes, 3, 3), jnp.float32) * 0.1,
        "shortcut_w": jax.random.normal(ks[6], (out_planes, in_planes, 1, 1), jnp.float32) * 0.1,
    }
    x = jax.random.normal(ks[7], (N, in_planes, H, W), jnp.float32)

    ref = _ref_forward(x, params, in_planes, out_planes, stride)

    # strict f32 path (exactness check for layout / indexing / fusion)
    fwd_f32 = jax.jit(functools.partial(
        basic_block_forward, in_planes=in_planes, out_planes=out_planes,
        stride=stride, compute_dtype=jnp.float32))
    out = fwd_f32(x, params)
    jax.block_until_ready(out)
    assert out.shape == (N, out_planes, H // stride, W // stride), out.shape
    assert jnp.allclose(out, ref, rtol=1e-4, atol=1e-4), \
        float(jnp.max(jnp.abs(out - ref)))

    # default bf16 operands / intermediates, f32 accumulation (MXU fast path)
    fwd_bf16 = jax.jit(functools.partial(
        basic_block_forward, in_planes=in_planes, out_planes=out_planes,
        stride=stride))
    out_bf16 = fwd_bf16(x, params)
    jax.block_until_ready(out_bf16)
    assert out_bf16.shape == out.shape
    assert bool(jnp.isfinite(out_bf16).all())
    assert float(jnp.max(jnp.abs(out_bf16 - ref))) < 0.15  # bf16 operand noise

    print("KERNEL_OK")
</pallas_src>

<mosaic_0001>
module attributes {stable_mosaic.version = 11 : i64} {
  func.func @kernel(%arg0: i32, %arg1: memref<4x9x9x4xf32, #tpu.memory_space<vmem>>, %arg2: memref<9x4x8xf32, #tpu.memory_space<vmem>>, %arg3: memref<1x4xf32, #tpu.memory_space<vmem>>, %arg4: memref<1x4xf32, #tpu.memory_space<vmem>>, %arg5: memref<4x9x9x1xf32, #tpu.memory_space<vmem>>, %arg6: memref<1x8x8x8xf32, #tpu.memory_space<vmem>>) attributes {dimension_semantics = [#tpu.dimension_semantics<parallel>], iteration_bounds = array<i64: 2>, scalar_prefetch = 0 : i64, scratch_operands = 0 : i64, tpu.core_type = #tpu.core_type<tc>, window_params = [{transform_indices = @transform_0, window_bounds = array<i64: 4, 9, 9, 4>}, {pipeline_mode = #tpu.pipeline_mode<synchronous>, transform_indices = @transform_1, window_bounds = array<i64: 9, 4, 8>}, {pipeline_mode = #tpu.pipeline_mode<synchronous>, transform_indices = @transform_2, window_bounds = array<i64: 1, 4>}, {pipeline_mode = #tpu.pipeline_mode<synchronous>, transform_indices = @transform_3, window_bounds = array<i64: 1, 4>}, {pipeline_mode = #tpu.pipeline_mode<synchronous>, transform_indices = @transform_4, window_bounds = array<i64: 4, 9, 9, 1>}, {transform_indices = @transform_5, window_bounds = array<i64: 1, 8, 8, 8>}]} {
    %c0 = arith.constant 0 : index
    %c0_0 = arith.constant 0 : index
    %c0_1 = arith.constant 0 : index
    %c0_2 = arith.constant 0 : index
    %0 = vector.load %arg1[%c0, %c0_0, %c0_1, %c0_2] : memref<4x9x9x4xf32, #tpu.memory_space<vmem>>, vector<4x9x9x4xf32>
    %c0_3 = arith.constant 0 : index
    %c0_4 = arith.constant 0 : index
    %1 = vector.load %arg3[%c0_3, %c0_4] : memref<1x4xf32, #tpu.memory_space<vmem>>, vector<1x4xf32>
    %2 = vector.shape_cast %1 : vector<1x4xf32> to vector<1x1x1x4xf32>
    %c0_5 = arith.constant 0 : index
    %c0_6 = arith.constant 0 : index
    %3 = vector.load %arg4[%c0_5, %c0_6] : memref<1x4xf32, #tpu.memory_space<vmem>>, vector<1x4xf32>
    %4 = vector.shape_cast %3 : vector<1x4xf32> to vector<1x1x1x4xf32>
    %5 = vector.broadcast %2 : vector<1x1x1x4xf32> to vector<4x9x9x4xf32>
    %6 = arith.mulf %0, %5 : vector<4x9x9x4xf32>
    %7 = vector.broadcast %4 : vector<1x1x1x4xf32> to vector<4x9x9x4xf32>
    %8 = arith.addf %6, %7 : vector<4x9x9x4xf32>
    %cst = arith.constant 0.000000e+00 : f32
    %9 = vector.broadcast %cst : f32 to vector<4x9x9x4xf32>
    %10 = arith.maximumf %8, %9 : vector<4x9x9x4xf32>
    %c0_7 = arith.constant 0 : index
    %c0_8 = arith.constant 0 : index
    %c0_9 = arith.constant 0 : index
    %c0_10 = arith.constant 0 : index
    %11 = vector.load %arg5[%c0_7, %c0_8, %c0_9, %c0_10] : memref<4x9x9x1xf32, #tpu.memory_space<vmem>>, vector<4x9x9x1xf32>
    %12 = vector.broadcast %11 : vector<4x9x9x1xf32> to vector<4x9x9x4xf32>
    %13 = arith.mulf %10, %12 : vector<4x9x9x4xf32>
    %cst_11 = arith.constant 0.000000e+00 : f32
    %14 = vector.broadcast %cst_11 : f32 to vector<64x8xf32>
    %15 = vector.extract_strided_slice %13 {offsets = [0, 0, 0, 0], sizes = [1, 8, 8, 4], strides = [1, 1, 1, 1]} : vector<4x9x9x4xf32> to vector<1x8x8x4xf32>
    %16 = vector.shape_cast %15 : vector<1x8x8x4xf32> to vector<8x8x4xf32>
    %17 = vector.shape_cast %16 : vector<8x8x4xf32> to vector<64x4xf32>
    %c0_12 = arith.constant 0 : index
    %c0_13 = arith.constant 0 : index
    %c0_14 = arith.constant 0 : index
    %18 = vector.load %arg2[%c0_12, %c0_13, %c0_14] : memref<9x4x8xf32, #tpu.memory_space<vmem>>, vector<1x4x8xf32>
    %19 = vector.shape_cast %18 : vector<1x4x8xf32> to vector<4x8xf32>
    %cst_15 = arith.constant dense<0.000000e+00> : vector<64x8xf32>
    %20 = tpu.matmul %17, %19, %cst_15 {dimension_numbers = #tpu.dot_dimension_numbers<[1], [0], [0], [1], [0, 0, 1, 1], [], []>} : vector<64x4xf32>, vector<4x8xf32>, vector<64x8xf32> -> vector<64x8xf32>
    %21 = arith.addf %14, %20 : vector<64x8xf32>
    %22 = vector.extract_strided_slice %13 {offsets = [1, 0, 0, 0], sizes = [1, 8, 8, 4], strides = [1, 1, 1, 1]} : vector<4x9x9x4xf32> to vector<1x8x8x4xf32>
    %23 = vector.shape_cast %22 : vector<1x8x8x4xf32> to vector<8x8x4xf32>
    %24 = vector.shape_cast %23 : vector<8x8x4xf32> to vector<64x4xf32>
    %c1 = arith.constant 1 : index
    %c0_16 = arith.constant 0 : index
    %c0_17 = arith.constant 0 : index
    %25 = vector.load %arg2[%c1, %c0_16, %c0_17] : memref<9x4x8xf32, #tpu.memory_space<vmem>>, vector<1x4x8xf32>
    %26 = vector.shape_cast %25 : vector<1x4x8xf32> to vector<4x8xf32>
    %cst_18 = arith.constant dense<0.000000e+00> : vector<64x8xf32>
    %27 = tpu.matmul %24, %26, %cst_18 {dimension_numbers = #tpu.dot_dimension_numbers<[1], [0], [0], [1], [0, 0, 1, 1], [], []>} : vector<64x4xf32>, vector<4x8xf32>, vector<64x8xf32> -> vector<64x8xf32>
    %28 = arith.addf %21, %27 : vector<64x8xf32>
    %29 = vector.extract_strided_slice %13 {offsets = [0, 0, 1, 0], sizes = [1, 8, 8, 4], strides = [1, 1, 1, 1]} : vector<4x9x9x4xf32> to vector<1x8x8x4xf32>
    %30 = vector.shape_cast %29 : vector<1x8x8x4xf32> to vector<8x8x4xf32>
    %31 = vector.shape_cast %30 : vector<8x8x4xf32> to vector<64x4xf32>
    %c2 = arith.constant 2 : index
    %c0_19 = arith.constant 0 : index
    %c0_20 = arith.constant 0 : index
    %32 = vector.load %arg2[%c2, %c0_19, %c0_20] : memref<9x4x8xf32, #tpu.memory_space<vmem>>, vector<1x4x8xf32>
    %33 = vector.shape_cast %32 : vector<1x4x8xf32> to vector<4x8xf32>
    %cst_21 = arith.constant dense<0.000000e+00> : vector<64x8xf32>
    %34 = tpu.matmul %31, %33, %cst_21 {dimension_numbers = #tpu.dot_dimension_numbers<[1], [0], [0], [1], [0, 0, 1, 1], [], []>} : vector<64x4xf32>, vector<4x8xf32>, vector<64x8xf32> -> vector<64x8xf32>
    %35 = arith.addf %28, %34 : vector<64x8xf32>
    %36 = vector.extract_strided_slice %13 {offsets = [2, 0, 0, 0], sizes = [1, 8, 8, 4], strides = [1, 1, 1, 1]} : vector<4x9x9x4xf32> to vector<1x8x8x4xf32>
    %37 = vector.shape_cast %36 : vector<1x8x8x4xf32> to vector<8x8x4xf32>
    %38 = vector.shape_cast %37 : vector<8x8x4xf32> to vector<64x4xf32>
    %c3 = arith.constant 3 : index
    %c0_22 = arith.constant 0 : index
    %c0_23 = arith.constant 0 : index
    %39 = vector.load %arg2[%c3, %c0_22, %c0_23] : memref<9x4x8xf32, #tpu.memory_space<vmem>>, vector<1x4x8xf32>
    %40 = vector.shape_cast %39 : vector<1x4x8xf32> to vector<4x8xf32>
    %cst_24 = arith.constant dense<0.000000e+00> : vector<64x8xf32>
    %41 = tpu.matmul %38, %40, %cst_24 {dimension_numbers = #tpu.dot_dimension_numbers<[1], [0], [0], [1], [0, 0, 1, 1], [], []>} : vector<64x4xf32>, vector<4x8xf32>, vector<64x8xf32> -> vector<64x8xf32>
    %42 = arith.addf %35, %41 : vector<64x8xf32>
    %43 = vector.extract_strided_slice %13 {offsets = [3, 0, 0, 0], sizes = [1, 8, 8, 4], strides = [1, 1, 1, 1]} : vector<4x9x9x4xf32> to vector<1x8x8x4xf32>
    %44 = vector.shape_cast %43 : vector<1x8x8x4xf32> to vector<8x8x4xf32>
    %45 = vector.shape_cast %44 : vector<8x8x4xf32> to vector<64x4xf32>
    %c4 = arith.constant 4 : index
    %c0_25 = arith.constant 0 : index
    %c0_26 = arith.constant 0 : index
    %46 = vector.load %arg2[%c4, %c0_25, %c0_26] : memref<9x4x8xf32, #tpu.memory_space<vmem>>, vector<1x4x8xf32>
    %47 = vector.shape_cast %46 : vector<1x4x8xf32> to vector<4x8xf32>
    %cst_27 = arith.constant dense<0.000000e+00> : vector<64x8xf32>
    %48 = tpu.matmul %45, %47, %cst_27 {dimension_numbers = #tpu.dot_dimension_numbers<[1], [0], [0], [1], [0, 0, 1, 1], [], []>} : vector<64x4xf32>, vector<4x8xf32>, vector<64x8xf32> -> vector<64x8xf32>
    %49 = arith.addf %42, %48 : vector<64x8xf32>
    %50 = vector.extract_strided_slice %13 {offsets = [2, 0, 1, 0], sizes = [1, 8, 8, 4], strides = [1, 1, 1, 1]} : vector<4x9x9x4xf32> to vector<1x8x8x4xf32>
    %51 = vector.shape_cast %50 : vector<1x8x8x4xf32> to vector<8x8x4xf32>
    %52 = vector.shape_cast %51 : vector<8x8x4xf32> to vector<64x4xf32>
    %c5 = arith.constant 5 : index
    %c0_28 = arith.constant 0 : index
    %c0_29 = arith.constant 0 : index
    %53 = vector.load %arg2[%c5, %c0_28, %c0_29] : memref<9x4x8xf32, #tpu.memory_space<vmem>>, vector<1x4x8xf32>
    %54 = vector.shape_cast %53 : vector<1x4x8xf32> to vector<4x8xf32>
    %cst_30 = arith.constant dense<0.000000e+00> : vector<64x8xf32>
    %55 = tpu.matmul %52, %54, %cst_30 {dimension_numbers = #tpu.dot_dimension_numbers<[1], [0], [0], [1], [0, 0, 1, 1], [], []>} : vector<64x4xf32>, vector<4x8xf32>, vector<64x8xf32> -> vector<64x8xf32>
    %56 = arith.addf %49, %55 : vector<64x8xf32>
    %57 = vector.extract_strided_slice %13 {offsets = [0, 1, 0, 0], sizes = [1, 8, 8, 4], strides = [1, 1, 1, 1]} : vector<4x9x9x4xf32> to vector<1x8x8x4xf32>
    %58 = vector.shape_cast %57 : vector<1x8x8x4xf32> to vector<8x8x4xf32>
    %59 = vector.shape_cast %58 : vector<8x8x4xf32> to vector<64x4xf32>
    %c6 = arith.constant 6 : index
    %c0_31 = arith.constant 0 : index
    %c0_32 = arith.constant 0 : index
    %60 = vector.load %arg2[%c6, %c0_31, %c0_32] : memref<9x4x8xf32, #tpu.memory_space<vmem>>, vector<1x4x8xf32>
    %61 = vector.shape_cast %60 : vector<1x4x8xf32> to vector<4x8xf32>
    %cst_33 = arith.constant dense<0.000000e+00> : vector<64x8xf32>
    %62 = tpu.matmul %59, %61, %cst_33 {dimension_numbers = #tpu.dot_dimension_numbers<[1], [0], [0], [1], [0, 0, 1, 1], [], []>} : vector<64x4xf32>, vector<4x8xf32>, vector<64x8xf32> -> vector<64x8xf32>
    %63 = arith.addf %56, %62 : vector<64x8xf32>
    %64 = vector.extract_strided_slice %13 {offsets = [1, 1, 0, 0], sizes = [1, 8, 8, 4], strides = [1, 1, 1, 1]} : vector<4x9x9x4xf32> to vector<1x8x8x4xf32>
    %65 = vector.shape_cast %64 : vector<1x8x8x4xf32> to vector<8x8x4xf32>
    %66 = vector.shape_cast %65 : vector<8x8x4xf32> to vector<64x4xf32>
    %c7 = arith.constant 7 : index
    %c0_34 = arith.constant 0 : index
    %c0_35 = arith.constant 0 : index
    %67 = vector.load %arg2[%c7, %c0_34, %c0_35] : memref<9x4x8xf32, #tpu.memory_space<vmem>>, vector<1x4x8xf32>
    %68 = vector.shape_cast %67 : vector<1x4x8xf32> to vector<4x8xf32>
    %cst_36 = arith.constant dense<0.000000e+00> : vector<64x8xf32>
    %69 = tpu.matmul %66, %68, %cst_36 {dimension_numbers = #tpu.dot_dimension_numbers<[1], [0], [0], [1], [0, 0, 1, 1], [], []>} : vector<64x4xf32>, vector<4x8xf32>, vector<64x8xf32> -> vector<64x8xf32>
    %70 = arith.addf %63, %69 : vector<64x8xf32>
    %71 = vector.extract_strided_slice %13 {offsets = [0, 1, 1, 0], sizes = [1, 8, 8, 4], strides = [1, 1, 1, 1]} : vector<4x9x9x4xf32> to vector<1x8x8x4xf32>
    %72 = vector.shape_cast %71 : vector<1x8x8x4xf32> to vector<8x8x4xf32>
    %73 = vector.shape_cast %72 : vector<8x8x4xf32> to vector<64x4xf32>
    %c8 = arith.constant 8 : index
    %c0_37 = arith.constant 0 : index
    %c0_38 = arith.constant 0 : index
    %74 = vector.load %arg2[%c8, %c0_37, %c0_38] : memref<9x4x8xf32, #tpu.memory_space<vmem>>, vector<1x4x8xf32>
    %75 = vector.shape_cast %74 : vector<1x4x8xf32> to vector<4x8xf32>
    %cst_39 = arith.constant dense<0.000000e+00> : vector<64x8xf32>
    %76 = tpu.matmul %73, %75, %cst_39 {dimension_numbers = #tpu.dot_dimension_numbers<[1], [0], [0], [1], [0, 0, 1, 1], [], []>} : vector<64x4xf32>, vector<4x8xf32>, vector<64x8xf32> -> vector<64x8xf32>
    %77 = arith.addf %70, %76 : vector<64x8xf32>
    %78 = vector.shape_cast %77 : vector<64x8xf32> to vector<1x8x8x8xf32>
    %c0_40 = arith.constant 0 : index
    %c0_41 = arith.constant 0 : index
    %c0_42 = arith.constant 0 : index
    %c0_43 = arith.constant 0 : index
    %79 = vector.load %arg6[%c0_40, %c0_41, %c0_42, %c0_43] : memref<1x8x8x8xf32, #tpu.memory_space<vmem>>, vector<1x8x8x8xf32>
    tpu.vector_store %arg6[%c0_40, %c0_41, %c0_42, %c0_43], %78 {strides = array<i32>} : memref<1x8x8x8xf32, #tpu.memory_space<vmem>>, vector<1x8x8x8xf32>,
    return
  }
  func.func @transform_0(%arg0: i32) -> (i32, i32, i32, i32) {
    %c0_i32 = arith.constant 0 : i32
    %c0_i32_0 = arith.constant 0 : i32
    %c0_i32_1 = arith.constant 0 : i32
    %c0_i32_2 = arith.constant 0 : i32
    return %arg0, %c0_i32, %c0_i32_0, %c0_i32_1 : i32, i32, i32, i32
  }
  func.func @transform_1(%arg0: i32) -> (i32, i32, i32) {
    %c0_i32 = arith.constant 0 : i32
    %c0_i32_0 = arith.constant 0 : i32
    %c0_i32_1 = arith.constant 0 : i32
    %c0_i32_2 = arith.constant 0 : i32
    return %c0_i32, %c0_i32_0, %c0_i32_1 : i32, i32, i32
  }
  func.func @transform_2(%arg0: i32) -> (i32, i32) {
    %c0_i32 = arith.constant 0 : i32
    %c0_i32_0 = arith.constant 0 : i32
    %c0_i32_1 = arith.constant 0 : i32
    return %c0_i32, %c0_i32_0 : i32, i32
  }
  func.func @transform_3(%arg0: i32) -> (i32, i32) {
    %c0_i32 = arith.constant 0 : i32
    %c0_i32_0 = arith.constant 0 : i32
    %c0_i32_1 = arith.constant 0 : i32
    return %c0_i32, %c0_i32_0 : i32, i32
  }
  func.func @transform_4(%arg0: i32) -> (i32, i32, i32, i32) {
    %c0_i32 = arith.constant 0 : i32
    %c0_i32_0 = arith.constant 0 : i32
    %c0_i32_1 = arith.constant 0 : i32
    %c0_i32_2 = arith.constant 0 : i32
    %c0_i32_3 = arith.constant 0 : i32
    return %c0_i32, %c0_i32_0, %c0_i32_1, %c0_i32_2 : i32, i32, i32, i32
  }
  func.func @transform_5(%arg0: i32) -> (i32, i32, i32, i32) {
    %c0_i32 = arith.constant 0 : i32
    %c0_i32_0 = arith.constant 0 : i32
    %c0_i32_1 = arith.constant 0 : i32
    %c0_i32_2 = arith.constant 0 : i32
    return %arg0, %c0_i32, %c0_i32_0, %c0_i32_1 : i32, i32, i32, i32
  }
}

module attributes {stable_mosaic.version = 11 : i64} {
  func.func @kernel(%arg0: i32, %arg1: memref<1x8x8x4xf32, #tpu.memory_space<vmem>>, %arg2: memref<1x4x8xf32, #tpu.memory_space<vmem>>, %arg3: memref<1x8x8x8xf32, #tpu.memory_space<vmem>>) attributes {dimension_semantics = [#tpu.dimension_semantics<parallel>], iteration_bounds = array<i64: 2>, scalar_prefetch = 0 : i64, scratch_operands = 0 : i64, tpu.core_type = #tpu.core_type<tc>, window_params = [{transform_indices = @transform_0, window_bounds = array<i64: 1, 8, 8, 4>}, {pipeline_mode = #tpu.pipeline_mode<synchronous>, transform_indices = @transform_1, window_bounds = array<i64: 1, 4, 8>}, {transform_indices = @transform_2, window_bounds = array<i64: 1, 8, 8, 8>}]} {
    %c0 = arith.constant 0 : index
    %c0_0 = arith.constant 0 : index
    %c0_1 = arith.constant 0 : index
    %c0_2 = arith.constant 0 : index
    %0 = vector.load %arg1[%c0, %c0_0, %c0_1, %c0_2] : memref<1x8x8x4xf32, #tpu.memory_space<vmem>>, vector<1x8x8x4xf32>
    %cst = arith.constant 0.000000e+00 : f32
    %1 = vector.broadcast %cst : f32 to vector<64x8xf32>
    %2 = vector.shape_cast %0 : vector<1x8x8x4xf32> to vector<8x8x4xf32>
    %3 = vector.shape_cast %2 : vector<8x8x4xf32> to vector<64x4xf32>
    %c0_3 = arith.constant 0 : index
    %c0_4 = arith.constant 0 : index
    %c0_5 = arith.constant 0 : index
    %4 = vector.load %arg2[%c0_3, %c0_4, %c0_5] : memref<1x4x8xf32, #tpu.memory_space<vmem>>, vector<1x4x8xf32>
    %5 = vector.shape_cast %4 : vector<1x4x8xf32> to vector<4x8xf32>
    %cst_6 = arith.constant dense<0.000000e+00> : vector<64x8xf32>
    %6 = tpu.matmul %3, %5, %cst_6 {dimension_numbers = #tpu.dot_dimension_numbers<[1], [0], [0], [1], [0, 0, 1, 1], [], []>} : vector<64x4xf32>, vector<4x8xf32>, vector<64x8xf32> -> vector<64x8xf32>
    %7 = arith.addf %1, %6 : vector<64x8xf32>
    %8 = vector.shape_cast %7 : vector<64x8xf32> to vector<1x8x8x8xf32>
    %c0_7 = arith.constant 0 : index
    %c0_8 = arith.constant 0 : index
    %c0_9 = arith.constant 0 : index
    %c0_10 = arith.constant 0 : index
    %9 = vector.load %arg3[%c0_7, %c0_8, %c0_9, %c0_10] : memref<1x8x8x8xf32, #tpu.memory_space<vmem>>, vector<1x8x8x8xf32>
    tpu.vector_store %arg3[%c0_7, %c0_8, %c0_9, %c0_10], %8 {strides = array<i32>} : memref<1x8x8x8xf32, #tpu.memory_space<vmem>>, vector<1x8x8x8xf32>,
    return
  }
  func.func @transform_0(%arg0: i32) -> (i32, i32, i32, i32) {
    %c0_i32 = arith.constant 0 : i32
    %c0_i32_0 = arith.constant 0 : i32
    %c0_i32_1 = arith.constant 0 : i32
    %c0_i32_2 = arith.constant 0 : i32
    return %arg0, %c0_i32, %c0_i32_0, %c0_i32_1 : i32, i32, i32, i32
  }
  func.func @transform_1(%arg0: i32) -> (i32, i32, i32) {
    %c0_i32 = arith.constant 0 : i32
    %c0_i32_0 = arith.constant 0 : i32
    %c0_i32_1 = arith.constant 0 : i32
    %c0_i32_2 = arith.constant 0 : i32
    return %c0_i32, %c0_i32_0, %c0_i32_1 : i32, i32, i32
  }
  func.func @transform_2(%arg0: i32) -> (i32, i32, i32, i32) {
    %c0_i32 = arith.constant 0 : i32
    %c0_i32_0 = arith.constant 0 : i32
    %c0_i32_1 = arith.constant 0 : i32
    %c0_i32_2 = arith.constant 0 : i32
    return %arg0, %c0_i32, %c0_i32_0, %c0_i32_1 : i32, i32, i32, i32
  }
}

module attributes {stable_mosaic.version = 11 : i64} {
  func.func @kernel(%arg0: i32, %arg1: memref<1x10x10x8xf32, #tpu.memory_space<vmem>>, %arg2: memref<9x8x8xf32, #tpu.memory_space<vmem>>, %arg3: memref<1x8xf32, #tpu.memory_space<vmem>>, %arg4: memref<1x8xf32, #tpu.memory_space<vmem>>, %arg5: memref<1x10x10x1xf32, #tpu.memory_space<vmem>>, %arg6: memref<1x8x8x8xf32, #tpu.memory_space<vmem>>, %arg7: memref<1x8x8x8xf32, #tpu.memory_space<vmem>>) attributes {dimension_semantics = [#tpu.dimension_semantics<parallel>], iteration_bounds = array<i64: 2>, scalar_prefetch = 0 : i64, scratch_operands = 0 : i64, tpu.core_type = #tpu.core_type<tc>, window_params = [{transform_indices = @transform_0, window_bounds = array<i64: 1, 10, 10, 8>}, {pipeline_mode = #tpu.pipeline_mode<synchronous>, transform_indices = @transform_1, window_bounds = array<i64: 9, 8, 8>}, {pipeline_mode = #tpu.pipeline_mode<synchronous>, transform_indices = @transform_2, window_bounds = array<i64: 1, 8>}, {pipeline_mode = #tpu.pipeline_mode<synchronous>, transform_indices = @transform_3, window_bounds = array<i64: 1, 8>}, {pipeline_mode = #tpu.pipeline_mode<synchronous>, transform_indices = @transform_4, window_bounds = array<i64: 1, 10, 10, 1>}, {transform_indices = @transform_5, window_bounds = array<i64: 1, 8, 8, 8>}, {transform_indices = @transform_6, window_bounds = array<i64: 1, 8, 8, 8>}]} {
    %c0 = arith.constant 0 : index
    %c0_0 = arith.constant 0 : index
    %c0_1 = arith.constant 0 : index
    %c0_2 = arith.constant 0 : index
    %0 = vector.load %arg1[%c0, %c0_0, %c0_1, %c0_2] : memref<1x10x10x8xf32, #tpu.memory_space<vmem>>, vector<1x10x10x8xf32>
    %c0_3 = arith.constant 0 : index
    %c0_4 = arith.constant 0 : index
    %1 = vector.load %arg3[%c0_3, %c0_4] : memref<1x8xf32, #tpu.memory_space<vmem>>, vector<1x8xf32>
    %2 = vector.shape_cast %1 : vector<1x8xf32> to vector<1x1x1x8xf32>
    %c0_5 = arith.constant 0 : index
    %c0_6 = arith.constant 0 : index
    %3 = vector.load %arg4[%c0_5, %c0_6] : memref<1x8xf32, #tpu.memory_space<vmem>>, vector<1x8xf32>
    %4 = vector.shape_cast %3 : vector<1x8xf32> to vector<1x1x1x8xf32>
    %5 = vector.broadcast %2 : vector<1x1x1x8xf32> to vector<1x10x10x8xf32>
    %6 = arith.mulf %0, %5 : vector<1x10x10x8xf32>
    %7 = vector.broadcast %4 : vector<1x1x1x8xf32> to vector<1x10x10x8xf32>
    %8 = arith.addf %6, %7 : vector<1x10x10x8xf32>
    %cst = arith.constant 0.000000e+00 : f32
    %9 = vector.broadcast %cst : f32 to vector<1x10x10x8xf32>
    %10 = arith.maximumf %8, %9 : vector<1x10x10x8xf32>
    %c0_7 = arith.constant 0 : index
    %c0_8 = arith.constant 0 : index
    %c0_9 = arith.constant 0 : index
    %c0_10 = arith.constant 0 : index
    %11 = vector.load %arg5[%c0_7, %c0_8, %c0_9, %c0_10] : memref<1x10x10x1xf32, #tpu.memory_space<vmem>>, vector<1x10x10x1xf32>
    %12 = vector.broadcast %11 : vector<1x10x10x1xf32> to vector<1x10x10x8xf32>
    %13 = arith.mulf %10, %12 : vector<1x10x10x8xf32>
    %c0_11 = arith.constant 0 : index
    %c0_12 = arith.constant 0 : index
    %c0_13 = arith.constant 0 : index
    %c0_14 = arith.constant 0 : index
    %14 = vector.load %arg6[%c0_11, %c0_12, %c0_13, %c0_14] : memref<1x8x8x8xf32, #tpu.memory_space<vmem>>, vector<1x8x8x8xf32>
    %15 = vector.shape_cast %14 : vector<1x8x8x8xf32> to vector<64x8xf32>
    %16 = vector.extract_strided_slice %13 {offsets = [0, 0, 0, 0], sizes = [1, 8, 8, 8], strides = [1, 1, 1, 1]} : vector<1x10x10x8xf32> to vector<1x8x8x8xf32>
    %17 = vector.shape_cast %16 : vector<1x8x8x8xf32> to vector<8x8x8xf32>
    %18 = vector.shape_cast %17 : vector<8x8x8xf32> to vector<64x8xf32>
    %c0_15 = arith.constant 0 : index
    %c0_16 = arith.constant 0 : index
    %c0_17 = arith.constant 0 : index
    %19 = vector.load %arg2[%c0_15, %c0_16, %c0_17] : memref<9x8x8xf32, #tpu.memory_space<vmem>>, vector<1x8x8xf32>
    %20 = vector.shape_cast %19 : vector<1x8x8xf32> to vector<8x8xf32>
    %cst_18 = arith.constant dense<0.000000e+00> : vector<64x8xf32>
    %21 = tpu.matmul %18, %20, %cst_18 {dimension_numbers = #tpu.dot_dimension_numbers<[1], [0], [0], [1], [0, 0, 1, 1], [], []>} : vector<64x8xf32>, vector<8x8xf32>, vector<64x8xf32> -> vector<64x8xf32>
    %22 = arith.addf %15, %21 : vector<64x8xf32>
    %23 = vector.extract_strided_slice %13 {offsets = [0, 0, 1, 0], sizes = [1, 8, 8, 8], strides = [1, 1, 1, 1]} : vector<1x10x10x8xf32> to vector<1x8x8x8xf32>
    %24 = vector.shape_cast %23 : vector<1x8x8x8xf32> to vector<8x8x8xf32>
    %25 = vector.shape_cast %24 : vector<8x8x8xf32> to vector<64x8xf32>
    %c1 = arith.constant 1 : index
    %c0_19 = arith.constant 0 : index
    %c0_20 = arith.constant 0 : index
    %26 = vector.load %arg2[%c1, %c0_19, %c0_20] : memref<9x8x8xf32, #tpu.memory_space<vmem>>, vector<1x8x8xf32>
    %27 = vector.shape_cast %26 : vector<1x8x8xf32> to vector<8x8xf32>
    %cst_21 = arith.constant dense<0.000000e+00> : vector<64x8xf32>
    %28 = tpu.matmul %25, %27, %cst_21 {dimension_numbers = #tpu.dot_dimension_numbers<[1], [0], [0], [1], [0, 0, 1, 1], [], []>} : vector<64x8xf32>, vector<8x8xf32>, vector<64x8xf32> -> vector<64x8xf32>
    %29 = arith.addf %22, %28 : vector<64x8xf32>
    %30 = vector.extract_strided_slice %13 {offsets = [0, 0, 2, 0], sizes = [1, 8, 8, 8], strides = [1, 1, 1, 1]} : vector<1x10x10x8xf32> to vector<1x8x8x8xf32>
    %31 = vector.shape_cast %30 : vector<1x8x8x8xf32> to vector<8x8x8xf32>
    %32 = vector.shape_cast %31 : vector<8x8x8xf32> to vector<64x8xf32>
    %c2 = arith.constant 2 : index
    %c0_22 = arith.constant 0 : index
    %c0_23 = arith.constant 0 : index
    %33 = vector.load %arg2[%c2, %c0_22, %c0_23] : memref<9x8x8xf32, #tpu.memory_space<vmem>>, vector<1x8x8xf32>
    %34 = vector.shape_cast %33 : vector<1x8x8xf32> to vector<8x8xf32>
    %cst_24 = arith.constant dense<0.000000e+00> : vector<64x8xf32>
    %35 = tpu.matmul %32, %34, %cst_24 {dimension_numbers = #tpu.dot_dimension_numbers<[1], [0], [0], [1], [0, 0, 1, 1], [], []>} : vector<64x8xf32>, vector<8x8xf32>, vector<64x8xf32> -> vector<64x8xf32>
    %36 = arith.addf %29, %35 : vector<64x8xf32>
    %37 = vector.extract_strided_slice %13 {offsets = [0, 1, 0, 0], sizes = [1, 8, 8, 8], strides = [1, 1, 1, 1]} : vector<1x10x10x8xf32> to vector<1x8x8x8xf32>
    %38 = vector.shape_cast %37 : vector<1x8x8x8xf32> to vector<8x8x8xf32>
    %39 = vector.shape_cast %38 : vector<8x8x8xf32> to vector<64x8xf32>
    %c3 = arith.constant 3 : index
    %c0_25 = arith.constant 0 : index
    %c0_26 = arith.constant 0 : index
    %40 = vector.load %arg2[%c3, %c0_25, %c0_26] : memref<9x8x8xf32, #tpu.memory_space<vmem>>, vector<1x8x8xf32>
    %41 = vector.shape_cast %40 : vector<1x8x8xf32> to vector<8x8xf32>
    %cst_27 = arith.constant dense<0.000000e+00> : vector<64x8xf32>
    %42 = tpu.matmul %39, %41, %cst_27 {dimension_numbers = #tpu.dot_dimension_numbers<[1], [0], [0], [1], [0, 0, 1, 1], [], []>} : vector<64x8xf32>, vector<8x8xf32>, vector<64x8xf32> -> vector<64x8xf32>
    %43 = arith.addf %36, %42 : vector<64x8xf32>
    %44 = vector.extract_strided_slice %13 {offsets = [0, 1, 1, 0], sizes = [1, 8, 8, 8], strides = [1, 1, 1, 1]} : vector<1x10x10x8xf32> to vector<1x8x8x8xf32>
    %45 = vector.shape_cast %44 : vector<1x8x8x8xf32> to vector<8x8x8xf32>
    %46 = vector.shape_cast %45 : vector<8x8x8xf32> to vector<64x8xf32>
    %c4 = arith.constant 4 : index
    %c0_28 = arith.constant 0 : index
    %c0_29 = arith.constant 0 : index
    %47 = vector.load %arg2[%c4, %c0_28, %c0_29] : memref<9x8x8xf32, #tpu.memory_space<vmem>>, vector<1x8x8xf32>
    %48 = vector.shape_cast %47 : vector<1x8x8xf32> to vector<8x8xf32>
    %cst_30 = arith.constant dense<0.000000e+00> : vector<64x8xf32>
    %49 = tpu.matmul %46, %48, %cst_30 {dimension_numbers = #tpu.dot_dimension_numbers<[1], [0], [0], [1], [0, 0, 1, 1], [], []>} : vector<64x8xf32>, vector<8x8xf32>, vector<64x8xf32> -> vector<64x8xf32>
    %50 = arith.addf %43, %49 : vector<64x8xf32>
    %51 = vector.extract_strided_slice %13 {offsets = [0, 1, 2, 0], sizes = [1, 8, 8, 8], strides = [1, 1, 1, 1]} : vector<1x10x10x8xf32> to vector<1x8x8x8xf32>
    %52 = vector.shape_cast %51 : vector<1x8x8x8xf32> to vector<8x8x8xf32>
    %53 = vector.shape_cast %52 : vector<8x8x8xf32> to vector<64x8xf32>
    %c5 = arith.constant 5 : index
    %c0_31 = arith.constant 0 : index
    %c0_32 = arith.constant 0 : index
    %54 = vector.load %arg2[%c5, %c0_31, %c0_32] : memref<9x8x8xf32, #tpu.memory_space<vmem>>, vector<1x8x8xf32>
    %55 = vector.shape_cast %54 : vector<1x8x8xf32> to vector<8x8xf32>
    %cst_33 = arith.constant dense<0.000000e+00> : vector<64x8xf32>
    %56 = tpu.matmul %53, %55, %cst_33 {dimension_numbers = #tpu.dot_dimension_numbers<[1], [0], [0], [1], [0, 0, 1, 1], [], []>} : vector<64x8xf32>, vector<8x8xf32>, vector<64x8xf32> -> vector<64x8xf32>
    %57 = arith.addf %50, %56 : vector<64x8xf32>
    %58 = vector.extract_strided_slice %13 {offsets = [0, 2, 0, 0], sizes = [1, 8, 8, 8], strides = [1, 1, 1, 1]} : vector<1x10x10x8xf32> to vector<1x8x8x8xf32>
    %59 = vector.shape_cast %58 : vector<1x8x8x8xf32> to vector<8x8x8xf32>
    %60 = vector.shape_cast %59 : vector<8x8x8xf32> to vector<64x8xf32>
    %c6 = arith.constant 6 : index
    %c0_34 = arith.constant 0 : index
    %c0_35 = arith.constant 0 : index
    %61 = vector.load %arg2[%c6, %c0_34, %c0_35] : memref<9x8x8xf32, #tpu.memory_space<vmem>>, vector<1x8x8xf32>
    %62 = vector.shape_cast %61 : vector<1x8x8xf32> to vector<8x8xf32>
    %cst_36 = arith.constant dense<0.000000e+00> : vector<64x8xf32>
    %63 = tpu.matmul %60, %62, %cst_36 {dimension_numbers = #tpu.dot_dimension_numbers<[1], [0], [0], [1], [0, 0, 1, 1], [], []>} : vector<64x8xf32>, vector<8x8xf32>, vector<64x8xf32> -> vector<64x8xf32>
    %64 = arith.addf %57, %63 : vector<64x8xf32>
    %65 = vector.extract_strided_slice %13 {offsets = [0, 2, 1, 0], sizes = [1, 8, 8, 8], strides = [1, 1, 1, 1]} : vector<1x10x10x8xf32> to vector<1x8x8x8xf32>
    %66 = vector.shape_cast %65 : vector<1x8x8x8xf32> to vector<8x8x8xf32>
    %67 = vector.shape_cast %66 : vector<8x8x8xf32> to vector<64x8xf32>
    %c7 = arith.constant 7 : index
    %c0_37 = arith.constant 0 : index
    %c0_38 = arith.constant 0 : index
    %68 = vector.load %arg2[%c7, %c0_37, %c0_38] : memref<9x8x8xf32, #tpu.memory_space<vmem>>, vector<1x8x8xf32>
    %69 = vector.shape_cast %68 : vector<1x8x8xf32> to vector<8x8xf32>
    %cst_39 = arith.constant dense<0.000000e+00> : vector<64x8xf32>
    %70 = tpu.matmul %67, %69, %cst_39 {dimension_numbers = #tpu.dot_dimension_numbers<[1], [0], [0], [1], [0, 0, 1, 1], [], []>} : vector<64x8xf32>, vector<8x8xf32>, vector<64x8xf32> -> vector<64x8xf32>
    %71 = arith.addf %64, %70 : vector<64x8xf32>
    %72 = vector.extract_strided_slice %13 {offsets = [0, 2, 2, 0], sizes = [1, 8, 8, 8], strides = [1, 1, 1, 1]} : vector<1x10x10x8xf32> to vector<1x8x8x8xf32>
    %73 = vector.shape_cast %72 : vector<1x8x8x8xf32> to vector<8x8x8xf32>
    %74 = vector.shape_cast %73 : vector<8x8x8xf32> to vector<64x8xf32>
    %c8 = arith.constant 8 : index
    %c0_40 = arith.constant 0 : index
    %c0_41 = arith.constant 0 : index
    %75 = vector.load %arg2[%c8, %c0_40, %c0_41] : memref<9x8x8xf32, #tpu.memory_space<vmem>>, vector<1x8x8xf32>
    %76 = vector.shape_cast %75 : vector<1x8x8xf32> to vector<8x8xf32>
    %cst_42 = arith.constant dense<0.000000e+00> : vector<64x8xf32>
    %77 = tpu.matmul %74, %76, %cst_42 {dimension_numbers = #tpu.dot_dimension_numbers<[1], [0], [0], [1], [0, 0, 1, 1], [], []>} : vector<64x8xf32>, vector<8x8xf32>, vector<64x8xf32> -> vector<64x8xf32>
    %78 = arith.addf %71, %77 : vector<64x8xf32>
    %79 = vector.shape_cast %78 : vector<64x8xf32> to vector<1x8x8x8xf32>
    %c0_43 = arith.constant 0 : index
    %c0_44 = arith.constant 0 : index
    %c0_45 = arith.constant 0 : index
    %c0_46 = arith.constant 0 : index
    %80 = vector.load %arg7[%c0_43, %c0_44, %c0_45, %c0_46] : memref<1x8x8x8xf32, #tpu.memory_space<vmem>>, vector<1x8x8x8xf32>
    tpu.vector_store %arg7[%c0_43, %c0_44, %c0_45, %c0_46], %79 {strides = array<i32>} : memref<1x8x8x8xf32, #tpu.memory_space<vmem>>, vector<1x8x8x8xf32>,
    return
  }
  func.func @transform_0(%arg0: i32) -> (i32, i32, i32, i32) {
    %c0_i32 = arith.constant 0 : i32
    %c0_i32_0 = arith.constant 0 : i32
    %c0_i32_1 = arith.constant 0 : i32
    %c0_i32_2 = arith.constant 0 : i32
    return %arg0, %c0_i32, %c0_i32_0, %c0_i32_1 : i32, i32, i32, i32
  }
  func.func @transform_1(%arg0: i32) -> (i32, i32, i32) {
    %c0_i32 = arith.constant 0 : i32
    %c0_i32_0 = arith.constant 0 : i32
    %c0_i32_1 = arith.constant 0 : i32
    %c0_i32_2 = arith.constant 0 : i32
    return %c0_i32, %c0_i32_0, %c0_i32_1 : i32, i32, i32
  }
  func.func @transform_2(%arg0: i32) -> (i32, i32) {
    %c0_i32 = arith.constant 0 : i32
    %c0_i32_0 = arith.constant 0 : i32
    %c0_i32_1 = arith.constant 0 : i32
    return %c0_i32, %c0_i32_0 : i32, i32
  }
  func.func @transform_3(%arg0: i32) -> (i32, i32) {
    %c0_i32 = arith.constant 0 : i32
    %c0_i32_0 = arith.constant 0 : i32
    %c0_i32_1 = arith.constant 0 : i32
    return %c0_i32, %c0_i32_0 : i32, i32
  }
  func.func @transform_4(%arg0: i32) -> (i32, i32, i32, i32) {
    %c0_i32 = arith.constant 0 : i32
    %c0_i32_0 = arith.constant 0 : i32
    %c0_i32_1 = arith.constant 0 : i32
    %c0_i32_2 = arith.constant 0 : i32
    %c0_i32_3 = arith.constant 0 : i32
    return %c0_i32, %c0_i32_0, %c0_i32_1, %c0_i32_2 : i32, i32, i32, i32
  }
  func.func @transform_5(%arg0: i32) -> (i32, i32, i32, i32) {
    %c0_i32 = arith.constant 0 : i32
    %c0_i32_0 = arith.constant 0 : i32
    %c0_i32_1 = arith.constant 0 : i32
    %c0_i32_2 = arith.constant 0 : i32
    return %arg0, %c0_i32, %c0_i32_0, %c0_i32_1 : i32, i32, i32, i32
  }
  func.func @transform_6(%arg0: i32) -> (i32, i32, i32, i32) {
    %c0_i32 = arith.constant 0 : i32
    %c0_i32_0 = arith.constant 0 : i32
    %c0_i32_1 = arith.constant 0 : i32
    %c0_i32_2 = arith.constant 0 : i32
    return %arg0, %c0_i32, %c0_i32_0, %c0_i32_1 : i32, i32, i32, i32
  }
}

</mosaic_0001>

<bundles_post_ra>
// kernel: basic_block_forward.4
= control target key start
LH: loop header
LB: loop body
LE: loop exit
PB: predicated region body
PF: predicated region fallthrough
CT: control target
= control target key end

     0   :  { %s429_s9 = smov 0   ;;  %s465_s0 = inlined_call_operand.vmem [shape: f32[2,8,8,4], index: 0, kind: input, shape index: {}]   ;;  %s466_s1 = inlined_call_operand.vmem [shape: f32[1,4,8], index: 1, kind: input, shape index: {}]   ;;  %s467_s2 = inlined_call_operand.vmem [shape: f32[2,8,8,8], index: 2, kind: output, shape index: {}]  }
   0x1 LB: > { %s351_s10 = sadd.s32 4294967295, %s412_s9   ;;  %p355_p0 = scmp.ge.s32.totalorder %s412_s9, 1  ;;  %s412_s9 = sphi %s429_s9, %s12_s9  }
   0x2   : > { %p112_p1 = scmp.lt.s32.totalorder %s412_s9, 3 }
   0x4   : > { %p113_p2 = pnand %p355_p0, %p112_p1 }
   0x5   : > { %v152_v0 = vld [vmem:[%s466_s1] sm:$0xf] (!%p113_p2)  ;;  %vm178_vm0 = vcmask (!%p113_p2), 1043456   ;;  %p134_p3 = scmp.lt.s32.totalorder (!%p113_p2), %s351_s10, 1  ;;  %vm153_vm1 = vcmask (!%p113_p2), 31744   ;;  %vm287_vm2 = vcmask (!%p113_p2), 64512  }
   0x6   : > { %116 = sbr.rel (%p113_p2) target bundleno = 237 (0xed), region = 28  ;;  %382 = vmatprep.subr.msk.mxu0 (!%p113_p2), %vm178_vm0, %v152_v0  ;;  %396 = vmatprep.subr.msk.mxu1 (!%p113_p2), %vm178_vm0, %v152_v0 }
   0x7   : > { %383 = vmatpush3.msk.msra.mxu0 (!%p113_p2), %vm178_vm0, %v152_v0  ;;  %397 = vmatpush3.msk.msra.mxu1 (!%p113_p2), %vm178_vm0, %v152_v0 }
   0xd   : > { %s469_s10 = smov (!%p134_p3, %s351_s10), 1 }
   0xe   : > { %s371_s13 = sshll.u32 %s469_s10, 6 }
   0xf   : > { %s138_s16 = scalar_lea.vmem %s465_s0, %s371_s13  ;;  %s143_s19 = scalar_lea.vmem %s467_s2, %s371_s13 }
  0x10   : > { %v144_v1 = vld [vmem:[%s138_s16] sm:$0xff]  ;;  %v145_v3 = vld [vmem:[%s138_s16 + $0x8] sm:$0xff]  ;;  %v146_v5 = vld [vmem:[%s138_s16 + $0x10] sm:$0xff] }
  0x11   : > { %v148_v2 = vld [vmem:[%s138_s16 + $0x20] sm:$0xff]  ;;  %384 = vmatprep.mubr.msk.f32.mxu0 %vm153_vm1, %v144_v1  ;;  %v149_v4 = vld [vmem:[%s138_s16 + $0x28] sm:$0xff]  ;;  %v150_v6 = vld [vmem:[%s138_s16 + $0x30] sm:$0xff] }
  0x12   : > { %390 = vmatprep.mubr.msk.f32.mxu1 %vm153_vm1, %v148_v2  ;;  %385 = vmatmul.mubr.msk.f32.vlgmr.msra.gmra.mrb[0].mxu0 %vm153_vm1, %v145_v3  ;;  %v147_v7 = vld [vmem:[%s138_s16 + $0x18] sm:$0xff] }
  0x13   : > { %391 = vmatmul.mubr.msk.f32.vlgmr.msra.gmra.mrb[0].mxu1 %vm153_vm1, %v149_v4  ;;  %387 = vmatprep.mubr.msk.f32.mxu0 %vm153_vm1, %v146_v5  ;;  %v151_v8 = vld [vmem:[%s138_s16 + $0x38] sm:$0xff] }
  0x14   : > { %393 = vmatprep.mubr.msk.f32.mxu1 %vm153_vm1, %v150_v6 }
  0x16   : > { %388 = vmatmul.mubr.msk.f32.gmra.mrb[2].mxu0 %vm153_vm1, %v147_v7 }
  0x17   : > { %394 = vmatmul.mubr.msk.f32.gmra.mrb[2].mxu1 %vm153_vm1, %v151_v8 }
  0xe5   : > { %v386_v9 = vpop.f32.mrb[0].mxu0 }
  0xe6   : > { %v392_v10 = vpop.f32.mrb[0].mxu1  ;;  %289 = vst.msk [vmem:[%s143_s19 + $0x8] sm:$0xff] %vm287_vm2, %v386_v9  ;;  %v248_v11 = vpop.f32.mrb[1].mxu0 }
  0xe7   : > { %293 = vst.msk [vmem:[%s143_s19 + $0x28] sm:$0xff] %vm287_vm2, %v392_v10  ;;  %v268_v12 = vpop.f32.mrb[1].mxu1  ;;  %288 = vst.msk [vmem:[%s143_s19] sm:$0xff] %vm287_vm2, %v248_v11 }
  0xe8   : > { %292 = vst.msk [vmem:[%s143_s19 + $0x20] sm:$0xff] %vm287_vm2, %v268_v12 }
  0xe9   : > { %v389_v13 = vpop.f32.mrb[2].mxu0 }
  0xea   : > { %v395_v14 = vpop.f32.mrb[2].mxu1  ;;  %291 = vst.msk [vmem:[%s143_s19 + $0x18] sm:$0xff] %vm287_vm2, %v389_v13  ;;  %v258_v15 = vpop.f32.mrb[3].mxu0 }
  0xeb   : > { %295 = vst.msk [vmem:[%s143_s19 + $0x38] sm:$0xff] %vm287_vm2, %v395_v14  ;;  %v278_v16 = vpop.f32.mrb[3].mxu1  ;;  %290 = vst.msk [vmem:[%s143_s19 + $0x10] sm:$0xff] %vm287_vm2, %v258_v15 }
  0xec   : > { %294 = vst.msk [vmem:[%s143_s19 + $0x30] sm:$0xff] %vm287_vm2, %v278_v16 }
  0xed PF: > { %s12_s9 = sadd.s32 1, %s412_s9  }
  0xee   : > { %p9_p4 = scmp.ge.s32.totalorder %s12_s9, 4  }
  0xf0   :  { %11 = sbr.rel (!%p9_p4) target bundleno = 1 (0x1), region = 58 }

// kernel: basic_block_forward.5
= control target key start
LH: loop header
LB: loop body
LE: loop exit
PB: predicated region body
PF: predicated region fallthrough
CT: control target
= control target key end

     0   :  { %s2199_s21 = smov 0   ;;  %s2677_s0 = inlined_call_operand.vmem [shape: f32[2,10,10,8], index: 0, kind: input, shape index: {}]   ;;  %s2678_s1 = inlined_call_operand.vmem [shape: f32[9,8,8], index: 1, kind: input, shape index: {}]   ;;  %s2679_s2 = inlined_call_operand.vmem [shape: f32[1,8], index: 2, kind: input, shape index: {}]   ;;  %s2680_s3 = inlined_call_operand.vmem [shape: f32[1,8], index: 3, kind: input, shape index: {}]   ;;  %s2681_s4 = inlined_call_operand.vmem [shape: f32[1,10,10,1], index: 4, kind: input, shape index: {}]   ;;  %s2682_s5 = inlined_call_operand.vmem [shape: f32[2,8,8,8], index: 5, kind: input, shape index: {}]   ;;  %s2683_s6 = inlined_call_operand.vmem [shape: f32[2,8,8,8], index: 6, kind: output, shape index: {}]  }
   0x1 LB: > { %s1766_s22 = sadd.s32 4294967295, %s2161_s21   ;;  %p1770_p0 = scmp.ge.s32.totalorder %s2161_s21, 1  ;;  %s2161_s21 = sphi %s2199_s21, %s16_s21  }
   0x2   : > { %p222_p1 = scmp.lt.s32.totalorder %s2161_s21, 3 }
   0x4   : > { %p223_p2 = pnand %p1770_p0, %p222_p1 }
   0x5   : > { %v368_v0 = vld [vmem:[%s2681_s4 + $0x10] sm:$0xff] (!%p223_p2)  ;;  %v366_v1 = vld [vmem:[%s2681_s4] sm:$0xff] (!%p223_p2)  ;;  %v2163_v2 = vmov (!%p223_p2), 0   ;;  %v369_v3 = vld [vmem:[%s2681_s4 + $0x18] sm:$0x3] (!%p223_p2)  ;;  %p257_p3 = scmp.lt.s32.totalorder (!%p223_p2), %s1766_s22, 1 }
   0x6   : > { %226 = sbr.rel (%p223_p2) target bundleno = 436 (0x1b4), region = 44  ;;  %2154 = vset.pattern.permute.xlu1 (!%p223_p2), %v2163_v2  ;;  %2153 = vset.pattern.permute.xlu0 (!%p223_p2), %v2163_v2  ;;  %v370_v4 = vld [vmem:[%s2681_s4 + $0x20] sm:$0xff] (!%p223_p2)  ;;  %v371_v5 = vld [vmem:[%s2681_s4 + $0x28] sm:$0x3] (!%p223_p2)  ;;  %v372_v6 = vld [vmem:[%s2681_s4 + $0x30] sm:$0xff] (!%p223_p2)  ;;  %vm515_vm0 = vcmask (!%p223_p2), 64512  }
   0x7   : > { %398 = vperm.xlu0 (!%p223_p2), %2153, %v368_v0   ;;  %388 = vperm.xlu1 (!%p223_p2), %2154, %v366_v1   ;;  %v514_v7 = vld [vmem:[%s2678_s1] sm:$0xff] (!%p223_p2)  ;;  %v373_v8 = vld [vmem:[%s2681_s4 + $0x38] sm:$0x3] (!%p223_p2)  ;;  %v375_v11 = vld [vmem:[%s2681_s4 + $0x48] sm:$0x3] (!%p223_p2)  ;;  %vm661_vm1 = vcmask (!%p223_p2), 1046528  }
   0x8   : > { %1943 = vmatprep.subr.mxu1 (!%p223_p2), %v514_v7  ;;  %v374_v9 = vld [vmem:[%s2681_s4 + $0x40] sm:$0xff] (!%p223_p2)  ;;  %v376_v12 = vld [vmem:[%s2681_s4 + $0x50] sm:$0xff] (!%p223_p2)  ;;  %v2250_v13 = vld [vmem:[%s2678_s1 + $0x8] sm:$0xff] (!%p223_p2)  ;;  %vm817_vm2 = vcmask (!%p223_p2), 1045504  }
   0x9   : > { %1944 = vmatpush3.msra.mxu1 (!%p223_p2), %v514_v7  ;;  %v2237_v10 = vld [vmem:[%s2678_s1 + $0x20] sm:$0xff] (!%p223_p2)  ;;  %v367_v15 = vld [vmem:[%s2681_s4 + $0x8] sm:$0x3] (!%p223_p2)  ;;  %v380_v17 = vld [vmem:[%s2681_s4 + $0x70] sm:$0xff] (!%p223_p2) }
   0xa   : > { %1999 = vmatprep.subr.mxu0 (!%p223_p2), %v2237_v10  ;;  %1957 = vmatprep.subr.mxu1 (!%p223_p2), %v2250_v13  ;;  %v378_v14 = vld [vmem:[%s2681_s4 + $0x60] sm:$0xff] (!%p223_p2)  ;;  %v2264_v16 = vld [vmem:[%s2678_s1 + $0x28] sm:$0xff] (!%p223_p2)  ;;  %v377_v18 = vld [vmem:[%s2681_s4 + $0x58] sm:$0x3] (!%p223_p2) }
   0xb   : > { %403 = vperm.xlu0 (!%p223_p2), %2153, %v369_v3   ;;  %408 = vperm.xlu1 (!%p223_p2), %2154, %v370_v4   ;;  %v379_v19 = vld [vmem:[%s2681_s4 + $0x68] sm:$0x3] (!%p223_p2)  ;;  %v381_v20 = vld [vmem:[%s2681_s4 + $0x78] sm:$0x3] (!%p223_p2)  ;;  %v382_v21 = vld [vmem:[%s2681_s4 + $0x80] sm:$0xff] (!%p223_p2) }
   0xc   : > { %2000 = vmatpush3.msra.mxu0 (!%p223_p2), %v2237_v10  ;;  %v383_v22 = vld [vmem:[%s2681_s4 + $0x88] sm:$0x3] (!%p223_p2)  ;;  %v2298_v23 = vld [vmem:[%s2679_s2] ss:$0 sm:$0xff] (!%p223_p2)  ;;  %v384_v27 = vld [vmem:[%s2681_s4 + $0x90] sm:$0xff] (!%p223_p2) }
   0xd   : > { %2013 = vmatprep.subr.mxu0 %v2264_v16  ;;  %s2685_s22 = smov (!%p257_p3, %s1766_s22), 1  ;;  %v2305_v26 = vld [vmem:[%s2680_s3] ss:$0 sm:$0xff]  ;;  %v385_v28 = vld [vmem:[%s2681_s4 + $0x98] sm:$0x3]  ;;  %v2350_v63 = vld [vmem:[%s2678_s1 + $0x10] sm:$0xff] }
   0xe   : > { %s2143_s17 = smul.u32 160, %s2685_s22  ;;  %s1860_s23 = sshll.u32 %s2685_s22, 6 }
   0xf   : > { %413 = vperm.xlu0 %2153, %v371_v5   ;;  %418 = vperm.xlu1 %2154, %v372_v6   ;;  %s2650_s22 = scalar_lea.vmem %s2683_s6, %s1860_s23 }
  0x10   : > { %s2293_s26 = scalar_lea.vmem %s2677_s0, %s2143_s17 }
  0x11   : > { %v291_v24 = vld [vmem:[%s2293_s26 + $0x98] sm:$0x3]  ;;  %v274_v30 = vld [vmem:[%s2293_s26 + $0x10] sm:$0xff]  ;;  %v272_v31 = vld [vmem:[%s2293_s26] sm:$0xff] }
  0x12   : > { %v319_v25 = vmul.f32 %v2298_v23, %v291_v24  ;;  %v302_v32 = vmul.f32 %v2298_v23, %v274_v30  ;;  %v300_v33 = vmul.f32 %v2298_v23, %v272_v31  ;;  %v275_v34 = vld [vmem:[%s2293_s26 + $0x18] sm:$0x3]  ;;  %v276_v35 = vld [vmem:[%s2293_s26 + $0x20] sm:$0xff]  ;;  %v277_v40 = vld [vmem:[%s2293_s26 + $0x28] sm:$0x3] }
  0x13   : > { %423 = vperm.xlu0 %2153, %v373_v8   ;;  %428 = vperm.xlu1 %2154, %v374_v9   ;;  %v303_v36 = vmul.f32 %v2298_v23, %v275_v34  ;;  %v304_v39 = vmul.f32 %v2298_v23, %v276_v35  ;;  %v278_v41 = vld [vmem:[%s2293_s26 + $0x30] sm:$0xff]  ;;  %v305_v43 = vmul.f32 %v2298_v23, %v277_v40  ;;  %v279_v44 = vld [vmem:[%s2293_s26 + $0x38] sm:$0x3]  ;;  %v280_v49 = vld [vmem:[%s2293_s26 + $0x40] sm:$0xff] }
  0x14   : > { %v2314_v29 = vadd.f32 %v2305_v26, %v319_v25  ;;  %v328_v37 = vadd.f32 %v2305_v26, %v302_v32  ;;  %v326_v38 = vadd.f32 %v2305_v26, %v300_v33  ;;  %v306_v48 = vmul.f32 %v2298_v23, %v278_v41  ;;  %v281_v60 = vld [vmem:[%s2293_s26 + $0x48] sm:$0x3]  ;;  %v282_v61 = vld [vmem:[%s2293_s26 + $0x50] sm:$0xff]  ;;  %v284_v9 = vld [vmem:[%s2293_s26 + $0x60] sm:$0xff] }
  0x15   : > { %v329_v42 = vadd.f32 %v2305_v26, %v303_v36  ;;  %v330_v47 = vadd.f32 %v2305_v26, %v304_v39  ;;  %v307_v50 = vmul.f32 %v2298_v23, %v279_v44  ;;  %v331_v54 = vadd.f32 %v2305_v26, %v305_v43  ;;  %v283_v30 = vld [vmem:[%s2293_s26 + $0x58] sm:$0x3]  ;;  %v285_v34 = vld [vmem:[%s2293_s26 + $0x68] sm:$0x3] }
  0x16   : > { %v348_v45 = vmax.f32 %v328_v37, 0.0  ;;  %v346_v46 = vmax.f32 %v326_v38, 0.0  ;;  %v308_v55 = vmul.f32 %v2298_v23, %v280_v49  ;;  %v332_v59 = vadd.f32 %v2305_v26, %v306_v48  ;;  %v287_v41 = vld [vmem:[%s2293_s26 + $0x78] sm:$0x3] }
  0x17   : > { %433 = vperm.xlu0 %2153, %v375_v11   ;;  %438 = vperm.xlu1 %2154, %v376_v12   ;;  %v349_v53 = vmax.f32 %v329_v42, 0.0  ;;  %v350_v58 = vmax.f32 %v330_v47, 0.0  ;;  %v333_v62 = vadd.f32 %v2305_v26, %v307_v50  ;;  %v309_v3 = vmul.f32 %v2298_v23, %v281_v60  ;;  %v273_v11 = vld [vmem:[%s2293_s26 + $0x8] sm:$0x3] }
  0x18   : > { %v334_v2 = vadd.f32 %v2305_v26, %v308_v55  ;;  %v310_v4 = vmul.f32 %v2298_v23, %v282_v61  ;;  %v351_v7 = vmax.f32 %v331_v54, 0.0  ;;  %v352_v8 = vmax.f32 %v332_v59, 0.0 }
  0x19   : > { %v311_v40 = vmul.f32 %v2298_v23, %v283_v30  ;;  %v313_v47 = vmul.f32 %v2298_v23, %v285_v34 }
  0x1b   : > { %448 = vperm.xlu0 %2153, %v378_v14   ;;  %393 = vperm.xlu1 %2154, %v367_v15   ;;  %v353_v15 = vmax.f32 %v333_v62, 0.0  ;;  %v337_v55 = vadd.f32 %v2305_v26, %v311_v40  ;;  %v288_v62 = vld [vmem:[%s2293_s26 + $0x80] sm:$0xff] }
  0x1f   : > { %458 = vperm.xlu0 %2153, %v380_v17   ;;  %443 = vperm.xlu1 %2154, %v377_v18  }
  0x23   : > { %453 = vperm.xlu0 %2153, %v379_v19   ;;  %463 = vperm.xlu1 %2154, %v381_v20   ;;  %v354_v19 = vmax.f32 %v334_v2, 0.0  ;;  %v336_v20 = vadd.f32 %v2305_v26, %v310_v4 }
  0x25   : > { %v356_v38 = vmax.f32 %v336_v20, 0.0 }
  0x27   : > { %468 = vperm.xlu0 %2153, %v382_v21   ;;  %473 = vperm.xlu1 %2154, %v383_v22   ;;  %v312_v21 = vmul.f32 %v2298_v23, %v284_v9  ;;  %v286_v22 = vld [vmem:[%s2293_s26 + $0x70] sm:$0xff] }
  0x28   : > { %v314_v33 = vmul.f32 %v2298_v23, %v286_v22 }
  0x29   : > { %v338_v39 = vadd.f32 %v2305_v26, %v312_v21 }
  0x2a   : > { %v340_v50 = vadd.f32 %v2305_v26, %v314_v33 }
  0x2b   : > { %478 = vperm.xlu0 %2153, %v384_v27   ;;  %483 = vperm.xlu1 %2154, %v385_v28   ;;  %v301_v28 = vmul.f32 %v2298_v23, %v273_v11  ;;  %v358_v54 = vmax.f32 %v338_v39, 0.0  ;;  %v357_v11 = vmax.f32 %v337_v55, 0.0 }
  0x2c   : > { %v360_v4 = vmax.f32 %v340_v50, 0.0 }
  0x86   : > { %v399_v51 = vpop.permute.xlu0 %398  ;;  %v389_v52 = vpop.permute.xlu1 %388 }
  0x87   : > { %v2337_v56 = vmul.f32 %v399_v51, %v348_v45  ;;  %v2339_v57 = vmul.f32 %v389_v52, %v346_v46  ;;  %v327_v45 = vadd.f32 %v2305_v26, %v301_v28  ;;  %v1831_v46 = vld [vmem:[%s2678_s1 + $0x30] sm:$0xff]  ;;  %v315_v51 = vmul.f32 %v2298_v23, %v287_v41  ;;  %v1840_v41 = vld [vmem:[%s2678_s1 + $0x38] sm:$0xff] }
  0x89   : > { %1945 = vmatprep.mubr.msk.f32.mxu1 %vm515_vm0, %v2339_v57  ;;  %v665_v14 = vrot.slane %v2337_v56, 1  ;;  %v347_v61 = vmax.f32 %v327_v45, 0.0  ;;  %v662_v30 = vrot.slane %v2339_v57, 1 }
  0x8a   : > { %v404_v0 = vpop.permute.xlu0 %403  ;;  %v409_v1 = vpop.permute.xlu1 %408  ;;  %1946 = vmatmul.mubr.msk.f32.vlgmr.msra.gmra.mrb[0].mxu1 %vm515_vm0, %v2337_v56 }
  0x8b   : > { %v2357_v5 = vmul.f32 %v404_v0, %v349_v53  ;;  %v2359_v6 = vmul.f32 %v409_v1, %v350_v58  ;;  %1958 = vmatpush3.msra.mxu1 %v2250_v13  ;;  %v335_v13 = vadd.f32 %v2305_v26, %v309_v3  ;;  %v339_v1 = vadd.f32 %v2305_v26, %v313_v47 }
  0x8c   : > { %1971 = vmatprep.subr.mxu1 %v2350_v63 }
  0x8d   : > { %v666_v12 = vrot.slane %v2357_v5, 1  ;;  %1948 = vmatprep.mubr.msk.f32.mxu1 %vm515_vm0, %v2359_v6  ;;  %v668_v32 = vrot.slane %v2359_v6, 1  ;;  %v355_v37 = vmax.f32 %v335_v13, 0.0  ;;  %v822_v0 = vrot.slane %v2357_v5, 2 }
  0x8e   : > { %v414_v17 = vpop.permute.xlu0 %413  ;;  %v419_v18 = vpop.permute.xlu1 %418  ;;  %v821_v5 = vrot.slane %v2337_v56, 2  ;;  %v359_v20 = vmax.f32 %v339_v1, 0.0  ;;  %v824_v21 = vrot.slane %v2359_v6, 2 }
  0x8f   : > { %v2373_v24 = vmul.f32 %v414_v17, %v351_v7  ;;  %v2375_v25 = vmul.f32 %v419_v18, %v352_v8  ;;  %v2378_v27 = vsel %vm661_vm1, %v665_v14, %v666_v12  ;;  %v341_v7 = vadd.f32 %v2305_v26, %v315_v51 }
  0x90   : > { %2001 = vmatprep.mubr.msk.f32.mxu0 %vm515_vm0, %v2378_v27  ;;  %v316_v12 = vmul.f32 %v2298_v23, %v288_v62  ;;  %v2447_v13 = vsel %vm817_vm2, %v821_v5, %v822_v0 }
  0x91   : > { %v669_v31 = vrot.slane %v2373_v24, 1  ;;  %1949 = vmatmul.mubr.msk.f32.gmra.mrb[2].mxu1 %vm515_vm0, %v2375_v25  ;;  %v671_v49 = vrot.slane %v2375_v25, 1  ;;  %v361_v28 = vmax.f32 %v341_v7, 0.0  ;;  %v827_v33 = vrot.slane %v2375_v25, 2 }
  0x92   : > { %v424_v35 = vpop.permute.xlu0 %423  ;;  %v429_v36 = vpop.permute.xlu1 %428  ;;  %v342_v34 = vadd.f32 %v2305_v26, %v316_v12  ;;  %v290_v12 = vld [vmem:[%s2293_s26 + $0x90] sm:$0xff] }
  0x93   : > { %v2393_v42 = vmul.f32 %v424_v35, %v353_v15  ;;  %v2395_v43 = vmul.f32 %v429_v36, %v354_v19  ;;  %v2398_v44 = vsel %vm661_vm1, %v668_v32, %v669_v31  ;;  %v825_v15 = vrot.slane %v2373_v24, 2 }
  0x94   : > { %2002 = vmatmul.mubr.msk.f32.vlgmr.msra.gmra.mrb[0].mxu0 %vm515_vm0, %v2398_v44  ;;  %v362_v51 = vmax.f32 %v342_v34, 0.0  ;;  %v365_v34 = vmax.f32 %v2314_v29, 0.0 }
  0x95   : > { %v672_v48 = vrot.slane %v2393_v42, 1  ;;  %1951 = vmatprep.mubr.msk.f32.mxu1 %vm515_vm0, %v2395_v43  ;;  %2014 = vmatpush3.msra.mxu0 %v2264_v16  ;;  %v289_v16 = vld [vmem:[%s2293_s26 + $0x88] sm:$0x3]  ;;  %v674_v3 = vrot.slane %v2395_v43, 1  ;;  %v828_v22 = vrot.slane %v2393_v42, 2  ;;  %v2461_v36 = vsel %vm817_vm2, %v824_v21, %v825_v15  ;;  %s2643_s26 = scalar_lea.vmem %s2682_s5, %s1860_s23 }
  0x96   : > { %v434_v52 = vpop.permute.xlu0 %433  ;;  %v439_v53 = vpop.permute.xlu1 %438  ;;  %2027 = vmatprep.subr.mxu0 %v1831_v46  ;;  %v317_v14 = vmul.f32 %v2298_v23, %v289_v16  ;;  %v830_v40 = vrot.slane %v2395_v43, 2 }
  0x97   : > { %v2415_v58 = vmul.f32 %v434_v52, %v355_v37  ;;  %v2417_v59 = vmul.f32 %v439_v53, %v356_v38  ;;  %v2420_v60 = vsel %vm661_vm1, %v671_v49, %v672_v48  ;;  %v2475_v45 = vsel %vm817_vm2, %v827_v33, %v828_v22 }
  0x98   : > { %2004 = vmatprep.mubr.msk.f32.mxu0 %vm515_vm0, %v2420_v60  ;;  %v343_v35 = vadd.f32 %v2305_v26, %v317_v14 }
  0x99   : > { %v675_v2 = vrot.slane %v2415_v58, 1  ;;  %1952 = vmatmul.mubr.msk.f32.gmra.mrb[4].mxu1 %vm515_vm0, %v2417_v59  ;;  %v831_v37 = vrot.slane %v2415_v58, 2  ;;  %v833_v48 = vrot.slane %v2417_v59, 2  ;;  %v1804_v58 = vld [vmem:[%s2678_s1 + $0x18] sm:$0xff] }
  0x9a   : > { %v449_v8 = vpop.permute.xlu0 %448  ;;  %v394_v9 = vpop.permute.xlu1 %393  ;;  %v363_v52 = vmax.f32 %v343_v35, 0.0 }
  0x9b   : > { %v2437_v17 = vmul.f32 %v449_v8, %v358_v54  ;;  %v2439_v18 = vmul.f32 %v394_v9, %v347_v61  ;;  %v2442_v19 = vsel %vm661_vm1, %v674_v3, %v675_v2  ;;  %v2483_v54 = vsel %vm817_vm2, %v830_v40, %v831_v37  ;;  %v506_v40 = vld [vmem:[%s2643_s26] sm:$0xff] }
  0x9c   : > { %2005 = vmatmul.mubr.msk.f32.gmra.mrb[2].mxu0 %vm515_vm0, %v2442_v19 }
  0x9d   : > { %v663_v24 = vrot.slane %v2439_v18, 1  ;;  %1954 = vmatprep.mubr.msk.f32.mxu1 %vm515_vm0, %v2437_v17  ;;  %2015 = vmatprep.mubr.msk.f32.mxu0 %vm515_vm0, %v2447_v13  ;;  %v836_v16 = vrot.slane %v2437_v17, 2  ;;  %v680_v15 = vrot.slane %v2437_v17, 1  ;;  %v819_v22 = vrot.slane %v2439_v18, 2 }
  0x9e   : > { %v459_v31 = vpop.permute.xlu0 %458  ;;  %v444_v32 = vpop.permute.xlu1 %443 }
  0x9f   : > { %v2464_v38 = vmul.f32 %v459_v31, %v360_v4  ;;  %v497_v39 = vmul.f32 %v444_v32, %v357_v11  ;;  %v664_v47 = vsel %vm661_vm1, %v662_v30, %v663_v24  ;;  %v677_v11 = vrot.slane %v2417_v59, 1  ;;  %v1849_v32 = vld [vmem:[%s2678_s1 + $0x40] sm:$0xff] }
  0xa0   : > { %2016 = vmatmul.mubr.msk.f32.vlgmr.msra.gmra.mrb[0].mxu0 %vm515_vm0, %v2461_v36  ;;  %v818_v31 = vrot.slane %v2339_v57, 2 }
  0xa1   : > { %v834_v42 = vrot.slane %v497_v39, 2  ;;  %2028 = vmatpush3.msra.mxu0 %v1831_v46  ;;  %1955 = vmatmul.mubr.msk.f32.gmra.mrb[6].mxu1 %vm515_vm0, %v2464_v38  ;;  %v839_v0 = vrot.slane %v2464_v38, 2  ;;  %v678_v8 = vrot.slane %v497_v39, 1  ;;  %v683_v30 = vrot.slane %v2464_v38, 1  ;;  %v507_v39 = vld [vmem:[%s2643_s26 + $0x8] sm:$0xff] }
  0xa2   : > { %2018 = vmatprep.mubr.msk.f32.mxu0 %vm515_vm0, %v2475_v45  ;;  %v454_v49 = vpop.permute.xlu0 %453  ;;  %v464_v50 = vpop.permute.xlu1 %463  ;;  %1959 = vmatprep.mubr.msk.f32.mxu1 %vm515_vm0, %v664_v47 }
  0xa3   : > { %v499_v46 = vmul.f32 %v454_v49, %v359_v20  ;;  %v501_v53 = vmul.f32 %v464_v50, %v361_v28  ;;  %v2486_v55 = vsel %vm817_vm2, %v833_v48, %v834_v42  ;;  %2041 = vmatprep.subr.mxu0 %v1840_v41  ;;  %v2531_v21 = vsel %vm661_vm1, %v677_v11, %v678_v8  ;;  %v508_v48 = vld [vmem:[%s2643_s26 + $0x10] sm:$0xff] }
  0xa4   : > { %2019 = vmatmul.mubr.msk.f32.gmra.mrb[2].mxu0 %vm515_vm0, %v2483_v54  ;;  %v318_v28 = vmul.f32 %v2298_v23, %v290_v12  ;;  %v820_v23 = vsel %vm817_vm2, %v818_v31, %v819_v22 }
  0xa5   : > { %v837_v61 = vrot.slane %v499_v46, 2  ;;  %v840_v62 = vrot.slane %v501_v53, 2  ;;  %1960 = vmatmul.mubr.msk.f32.vlgmr.msra.gmra.mrb[0].mxu1 %vm515_vm0, %v2378_v27  ;;  %2021 = vmatprep.mubr.msk.f32.mxu0 %vm515_vm0, %v2486_v55  ;;  %v681_v9 = vrot.slane %v499_v46, 1  ;;  %v684_v20 = vrot.slane %v501_v53, 1  ;;  %v511_v46 = vld [vmem:[%s2643_s26 + $0x28] sm:$0xff] }
  0xa6   : > { %v469_v1 = vpop.permute.xlu0 %468  ;;  %v474_v2 = vpop.permute.xlu1 %473  ;;  %1962 = vmatprep.mubr.msk.f32.mxu1 %vm515_vm0, %v2398_v44  ;;  %1972 = vmatpush3.msra.mxu1 %v2350_v63  ;;  %v344_v33 = vadd.f32 %v2305_v26, %v318_v28 }
  0xa7   : > { %v2502_v3 = vmul.f32 %v469_v1, %v362_v51  ;;  %v2504_v4 = vmul.f32 %v474_v2, %v363_v52  ;;  %v2507_v27 = vsel %vm817_vm2, %v836_v16, %v837_v61  ;;  %v2510_v7 = vsel %vm817_vm2, %v839_v0, %v840_v62  ;;  %1985 = vmatprep.subr.mxu1 %v1804_v58 }
  0xa8   : > { %2022 = vmatmul.mubr.msk.f32.gmra.mrb[4].mxu0 %vm515_vm0, %v2507_v27  ;;  %v2539_v24 = vsel %vm661_vm1, %v680_v15, %v681_v9  ;;  %v685_v18 = vsel %vm661_vm1, %v683_v30, %v684_v20  ;;  %v364_v57 = vmax.f32 %v344_v33, 0.0 }
  0xa9   : > { %v1213_v5 = vrot.slane %v2504_v4, 2  ;;  %1963 = vmatmul.mubr.msk.f32.gmra.mrb[2].mxu1 %vm515_vm0, %v2420_v60  ;;  %2024 = vmatprep.mubr.msk.f32.mxu0 %vm515_vm0, %v2510_v7  ;;  %v1212_v63 = vrot.slane %v2502_v3, 2  ;;  %v1093_v37 = vrot.slane %v2504_v4, 1  ;;  %v1092_v29 = vrot.slane %v2502_v3, 1 }
  0xaa   : > { %1965 = vmatprep.mubr.msk.f32.mxu1 %vm515_vm0, %v2442_v19  ;;  %v479_v26 = vpop.permute.xlu0 %478  ;;  %v484_v35 = vpop.permute.xlu1 %483 }
  0xab   : > { %v2525_v14 = vsel %vm817_vm2, %v1212_v63, %v1213_v5 }
  0xac   : > { %2025 = vmatmul.mubr.msk.f32.gmra.mrb[6].mxu0 %vm515_vm0, %v2525_v14 }
  0xad   : > { %1966 = vmatmul.mubr.msk.f32.gmra.mrb[4].mxu1 %vm515_vm0, %v2531_v21  ;;  %2029 = vmatprep.mubr.msk.f32.mxu0 %vm515_vm0, %v2359_v6 }
  0xae   : > { %1968 = vmatprep.mubr.msk.f32.mxu1 %vm515_vm0, %v2539_v24 }
  0xb0   : > { %2030 = vmatmul.mubr.msk.f32.vlgmr.msra.gmra.mrb[0].mxu0 %vm515_vm0, %v2375_v25 }
  0xb1   : > { %2042 = vmatpush3.msra.mxu0 %v1840_v41  ;;  %1969 = vmatmul.mubr.msk.f32.gmra.mrb[6].mxu1 %vm515_vm0, %v685_v18 }
  0xb2   : > { %2032 = vmatprep.mubr.msk.f32.mxu0 %vm515_vm0, %v2395_v43  ;;  %1973 = vmatprep.mubr.msk.f32.mxu1 %vm515_vm0, %v820_v23 }
  0xb3   : > { %2055 = vmatprep.subr.mxu0 %v1849_v32 }
  0xb4   : > { %2033 = vmatmul.mubr.msk.f32.gmra.mrb[2].mxu0 %vm515_vm0, %v2417_v59 }
  0xb5   : > { %1974 = vmatmul.mubr.msk.f32.vlgmr.msra.gmra.mrb[0].mxu1 %vm515_vm0, %v2447_v13  ;;  %2035 = vmatprep.mubr.msk.f32.mxu0 %vm515_vm0, %v2437_v17  ;;  %v504_v13 = vmul.f32 %v479_v26, %v364_v57 }
  0xb6   : > { %1976 = vmatprep.mubr.msk.f32.mxu1 %vm515_vm0, %v2461_v36  ;;  %1986 = vmatpush3.msra.mxu1 %v1804_v58 }
  0xb7   : > { %2069 = vmatprep.subr.mxu1 %v2237_v10 }
  0xb8   : > { %2036 = vmatmul.mubr.msk.f32.gmra.mrb[4].mxu0 %vm515_vm0, %v2464_v38 }
  0xb9   : > { %1977 = vmatmul.mubr.msk.f32.gmra.mrb[2].mxu1 %vm515_vm0, %v2475_v45  ;;  %2038 = vmatprep.mubr.msk.f32.mxu0 %vm515_vm0, %v2502_v3 }
  0xba   : > { %1979 = vmatprep.mubr.msk.f32.mxu1 %vm515_vm0, %v2483_v54 }
  0xbc   : > { %2039 = vmatmul.mubr.msk.f32.gmra.mrb[6].mxu0 %vm515_vm0, %v504_v13 }
  0xbd   : > { %1980 = vmatmul.mubr.msk.f32.gmra.mrb[4].mxu1 %vm515_vm0, %v2486_v55  ;;  %2043 = vmatprep.mubr.msk.f32.mxu0 %vm515_vm0, %v2398_v44  ;;  %v505_v44 = vmul.f32 %v484_v35, %v365_v34 }
  0xbe   : > { %1982 = vmatprep.mubr.msk.f32.mxu1 %vm515_vm0, %v2507_v27 }
  0xc0   : > { %2044 = vmatmul.mubr.msk.f32.vlgmr.msra.gmra.mrb[0].mxu0 %vm515_vm0, %v2420_v60  ;;  %v1452_v60 = vrot.slane %v505_v44, 1 }
  0xc1   : > { %2056 = vmatpush3.msra.mxu0 %v1849_v32  ;;  %1983 = vmatmul.mubr.msk.f32.gmra.mrb[6].mxu1 %vm515_vm0, %v2510_v7 }
  0xc2   : > { %2046 = vmatprep.mubr.msk.f32.mxu0 %vm515_vm0, %v2442_v19  ;;  %1987 = vmatprep.mubr.msk.f32.mxu1 %vm515_vm0, %v2337_v56  ;;  %v1451_v56 = vrot.slane %v504_v13, 1  ;;  %v1094_v19 = vsel %vm661_vm1, %v1092_v29, %v1093_v37 }
  0xc4   : > { %2047 = vmatmul.mubr.msk.f32.gmra.mrb[2].mxu0 %vm515_vm0, %v2531_v21 }
  0xc5   : > { %1988 = vmatmul.mubr.msk.f32.vlgmr.msra.gmra.mrb[0].mxu1 %vm515_vm0, %v2359_v6  ;;  %2049 = vmatprep.mubr.msk.f32.mxu0 %vm515_vm0, %v2539_v24  ;;  %v1453_v6 = vsel %vm661_vm1, %v1451_v56, %v1452_v60 }
  0xc6   : > { %1990 = vmatprep.mubr.msk.f32.mxu1 %vm515_vm0, %v2375_v25  ;;  %2070 = vmatpush3.msra.mxu1 %v2237_v10  ;;  %v1571_v10 = vrot.slane %v504_v13, 2  ;;  %v1572_v25 = vrot.slane %v505_v44, 2 }
  0xc8   : > { %2050 = vmatmul.mubr.msk.f32.gmra.mrb[4].mxu0 %vm515_vm0, %v685_v18 }
  0xc9   : > { %1991 = vmatmul.mubr.msk.f32.gmra.mrb[2].mxu1 %vm515_vm0, %v2395_v43  ;;  %2052 = vmatprep.mubr.msk.f32.mxu0 %vm515_vm0, %v1094_v19  ;;  %v1573_v43 = vsel %vm817_vm2, %v1571_v10, %v1572_v25 }
  0xca   : > { %1993 = vmatprep.mubr.msk.f32.mxu1 %vm515_vm0, %v2417_v59 }
  0xcc   : > { %2053 = vmatmul.mubr.msk.f32.gmra.mrb[6].mxu0 %vm515_vm0, %v1453_v6 }
  0xcd   : > { %1994 = vmatmul.mubr.msk.f32.gmra.mrb[4].mxu1 %vm515_vm0, %v2437_v17  ;;  %2057 = vmatprep.mubr.msk.f32.mxu0 %vm515_vm0, %v2461_v36 }
  0xce   : > { %1996 = vmatprep.mubr.msk.f32.mxu1 %vm515_vm0, %v2464_v38 }
  0xd0   : > { %2058 = vmatmul.mubr.msk.f32.vlgmr.msra.gmra.mrb[0].mxu0 %vm515_vm0, %v2475_v45  ;;  %v509_v45 = vld [vmem:[%s2643_s26 + $0x18] sm:$0xff] }
  0xd1   : > { %1997 = vmatmul.mubr.msk.f32.gmra.mrb[6].mxu1 %vm515_vm0, %v2502_v3  ;;  %2060 = vmatprep.mubr.msk.f32.mxu0 %vm515_vm0, %v2483_v54  ;;  %v513_v3 = vld [vmem:[%s2643_s26 + $0x38] sm:$0xff] }
  0xd2   : > { %2007 = vmatprep.mubr.msk.f32.mxu1 %vm515_vm0, %v2531_v21 }
  0xd4   : > { %2061 = vmatmul.mubr.msk.f32.gmra.mrb[2].mxu0 %vm515_vm0, %v2486_v55  ;;  %v510_v55 = vld [vmem:[%s2643_s26 + $0x20] sm:$0xff] }
  0xd5   : > { %2008 = vmatmul.mubr.msk.f32.vlgmr.msra.gmra.mrb[4].mxu1 %vm515_vm0, %v2539_v24  ;;  %2063 = vmatprep.mubr.msk.f32.mxu0 %vm515_vm0, %v2507_v27  ;;  %v512_v27 = vld [vmem:[%s2643_s26 + $0x30] sm:$0xff] }
  0xd6   : > { %2010 = vmatprep.mubr.msk.f32.mxu1 %vm515_vm0, %v685_v18 }
  0xd8   : > { %2064 = vmatmul.mubr.msk.f32.gmra.mrb[4].mxu0 %vm515_vm0, %v2510_v7 }
  0xd9   : > { %2011 = vmatmul.mubr.msk.f32.gmra.mrb[6].mxu1 %vm515_vm0, %v1094_v19  ;;  %2066 = vmatprep.mubr.msk.f32.mxu0 %vm515_vm0, %v2525_v14 }
  0xdc   : > { %2067 = vmatmul.mubr.msk.f32.gmra.mrb[6].mxu0 %vm515_vm0, %v1573_v43 }
 0x198   : > { %v1989_v59 = vpop.f32.mrb[0].mxu1 }
 0x199   : > { %v1044_v17 = vpop.f32.mrb[1].mxu1  ;;  %v2071_v41 = vadd.f32 %v1989_v59, %v507_v39 }
 0x19a   : > { %v2073_v42 = vadd.f32 %v1044_v17, %v506_v40 }
 0x19c   : > { %v1992_v36 = vpop.f32.mrb[2].mxu1 }
 0x19d   : > { %v1054_v38 = vpop.f32.mrb[3].mxu1  ;;  %v2075_v52 = vadd.f32 %v1992_v36, %v509_v45 }
 0x19e   : > { %v2077_v53 = vadd.f32 %v1054_v38, %v508_v48 }
 0x1a3   : > { %v2059_v47 = vpop.f32.mrb[0].mxu0 }
 0x1a4   : > { %v2072_v49 = vadd.f32 %v2071_v41, %v2059_v47  ;;  %v1644_v50 = vpop.f32.mrb[1].mxu0 }
 0x1a5   : > { %v2074_v51 = vadd.f32 %v2073_v42, %v1644_v50 }
 0x1a6   : > { %1692 = vst.msk [vmem:[%s2650_s22 + $0x8] sm:$0xff] %vm515_vm0, %v2072_v49 }
 0x1a7   : > { %1691 = vst.msk [vmem:[%s2650_s22] sm:$0xff] %vm515_vm0, %v2074_v51  ;;  %v2062_v54 = vpop.f32.mrb[2].mxu0 }
 0x1a8   : > { %v2076_v58 = vadd.f32 %v2075_v52, %v2062_v54  ;;  %v2009_v61 = vpop.f32.mrb[4].mxu1  ;;  %v1654_v62 = vpop.f32.mrb[3].mxu0 }
 0x1a9   : > { %v2079_v16 = vadd.f32 %v2009_v61, %v511_v46  ;;  %v2078_v0 = vadd.f32 %v2077_v53, %v1654_v62  ;;  %v1185_v1 = vpop.f32.mrb[5].mxu1 }
 0x1aa   : > { %1694 = vst.msk [vmem:[%s2650_s22 + $0x18] sm:$0xff] %vm515_vm0, %v2076_v58  ;;  %v2081_v2 = vadd.f32 %v1185_v1, %v510_v55 }
 0x1ab   : > { %1693 = vst.msk [vmem:[%s2650_s22 + $0x10] sm:$0xff] %vm515_vm0, %v2078_v0  ;;  %v2065_v4 = vpop.f32.mrb[4].mxu0 }
 0x1ac   : > { %v2080_v7 = vadd.f32 %v2079_v16, %v2065_v4  ;;  %v2012_v8 = vpop.f32.mrb[6].mxu1  ;;  %v1664_v9 = vpop.f32.mrb[5].mxu0 }
 0x1ad   : > { %v2083_v5 = vadd.f32 %v2012_v8, %v513_v3  ;;  %v2082_v63 = vadd.f32 %v2081_v2, %v1664_v9  ;;  %v1195_v11 = vpop.f32.mrb[7].mxu1 }
 0x1ae   : > { %1696 = vst.msk [vmem:[%s2650_s22 + $0x28] sm:$0xff] %vm515_vm0, %v2080_v7  ;;  %v2085_v12 = vadd.f32 %v1195_v11, %v512_v27 }
 0x1af   : > { %1695 = vst.msk [vmem:[%s2650_s22 + $0x20] sm:$0xff] %vm515_vm0, %v2082_v63  ;;  %v2068_v14 = vpop.f32.mrb[6].mxu0 }
 0x1b0   : > { %v2084_v15 = vadd.f32 %v2083_v5, %v2068_v14  ;;  %v1674_v20 = vpop.f32.mrb[7].mxu0 }
 0x1b1   : > { %v2086_v21 = vadd.f32 %v2085_v12, %v1674_v20 }
 0x1b2   : > { %1698 = vst.msk [vmem:[%s2650_s22 + $0x38] sm:$0xff] %vm515_vm0, %v2084_v15 }
 0x1b3   : > { %1697 = vst.msk [vmem:[%s2650_s22 + $0x30] sm:$0xff] %vm515_vm0, %v2086_v21 }
 0x1b4 PF: > { %s16_s21 = sadd.s32 1, %s2161_s21  }
 0x1b5   : > { %p13_p4 = scmp.ge.s32.totalorder %s16_s21, 4  }
 0x1b7   :  { %15 = sbr.rel (!%p13_p4) target bundleno = 1 (0x1), region = 85 }

// kernel: basic_block_forward.3
= control target key start
LH: loop header
LB: loop body
LE: loop exit
PB: predicated region body
PF: predicated region fallthrough
CT: control target
= control target key end

     0   :  { %s2548_s18 = smov 0   ;;  %s3185_s0 = inlined_call_operand.vmem [shape: f32[8,9,9,4], index: 0, kind: input, shape index: {}]   ;;  %s3186_s1 = inlined_call_operand.vmem [shape: f32[9,4,8], index: 1, kind: input, shape index: {}]   ;;  %s3187_s2 = inlined_call_operand.vmem [shape: f32[1,4], index: 2, kind: input, shape index: {}]   ;;  %s3188_s3 = inlined_call_operand.vmem [shape: f32[1,4], index: 3, kind: input, shape index: {}]   ;;  %s3189_s4 = inlined_call_operand.vmem [shape: f32[4,9,9,1], index: 4, kind: input, shape index: {}]   ;;  %s3190_s5 = inlined_call_operand.vmem [shape: f32[2,8,8,8], index: 5, kind: output, shape index: {}]  }
   0x1 LB: > { %s2554_s19 = sadd.s32 4294967295, %s2515_s18   ;;  %p2125_p0 = scmp.ge.s32.totalorder %s2515_s18, 1  ;;  %s2515_s18 = sphi %s2548_s18, %s15_s18  }
   0x2   : > { %p189_p1 = scmp.lt.s32.totalorder %s2515_s18, 3 }
   0x4   : > { %p190_p2 = pnand %p2125_p0, %p189_p1 }
   0x5   : > { %v467_v0 = vld [vmem:[%s3189_s4 + $0xa0] sm:$0xff] (!%p190_p2)  ;;  %v466_v1 = vld [vmem:[%s3189_s4 + $0x90] sm:$0xff] (!%p190_p2)  ;;  %v2517_v2 = vmov (!%p190_p2), 0   ;;  %v476_v10 = vld [vmem:[%s3189_s4 + $0x128] sm:$0x1] (!%p190_p2)  ;;  %vm833_vm0 = vcmask (!%p190_p2), 1043456  }
   0x6   : > { %193 = sbr.rel (%p190_p2) target bundleno = 468 (0x1d4), region = 40  ;;  %2508 = vset.pattern.permute.xlu1 (!%p190_p2), %v2517_v2  ;;  %2507 = vset.pattern.permute.xlu0 (!%p190_p2), %v2517_v2  ;;  %v492_v3 = vld [vmem:[%s3189_s4 + $0x1c0] sm:$0xff] (!%p190_p2)  ;;  %v491_v4 = vld [vmem:[%s3189_s4 + $0x1b0] sm:$0xff] (!%p190_p2)  ;;  %v478_v12 = vld [vmem:[%s3189_s4 + $0x138] sm:$0x1] (!%p190_p2)  ;;  %s2126_s11 = sshll.u32 (!%p190_p2), %s2554_s19, 2 }
   0x7   : > { %596 = vperm.xlu1 (!%p190_p2), %2508, %v467_v0   ;;  %591 = vperm.xlu0 (!%p190_p2), %2507, %v466_v1   ;;  %v493_v5 = vld [vmem:[%s3189_s4 + $0x1d0] sm:$0xff] (!%p190_p2)  ;;  %v475_v7 = vld [vmem:[%s3189_s4 + $0x120] sm:$0xff] (!%p190_p2)  ;;  %v480_v18 = vld [vmem:[%s3189_s4 + $0x148] sm:$0x1] (!%p190_p2)  ;;  %p219_p3 = scmp.lt.s32.totalorder (!%p190_p2), %s2126_s11, 7  ;;  %vm808_vm1 = vcmask (!%p190_p2), 31744  }
   0x8   : > { %v468_v6 = vld [vmem:[%s3189_s4 + $0xb0] sm:$0xff] (!%p190_p2)  ;;  %v469_v8 = vld [vmem:[%s3189_s4 + $0xc0] sm:$0xff] (!%p190_p2)  ;;  %v482_v20 = vld [vmem:[%s3189_s4 + $0x158] sm:$0x1] (!%p190_p2)  ;;  %vm1082_vm2 = vcmask (!%p190_p2), 1046528   ;;  %p225_p4 = scmp.lt.s32.totalorder (!%p190_p2), %s2554_s19, 1 }
   0x9   : > { %v494_v9 = vld [vmem:[%s3189_s4 + $0x1e0] sm:$0xff] (!%p190_p2)  ;;  %v477_v13 = vld [vmem:[%s3189_s4 + $0x130] sm:$0xff] (!%p190_p2)  ;;  %v484_v24 = vld [vmem:[%s3189_s4 + $0x168] sm:$0x1] (!%p190_p2)  ;;  %vm2057_vm3 = vcmask (!%p190_p2), 64512  }
   0xa   : > { %v2132_v11 = vld [vmem:[%s3186_s1 + $0x4] sm:$0xf] (!%p190_p2)  ;;  %v2601_v14 = vld [vmem:[%s3186_s1 + $0x10] sm:$0xf] (!%p190_p2)  ;;  %v2617_v17 = vld [vmem:[%s3186_s1 + $0x14] sm:$0xf] (!%p190_p2) }
   0xb   : > { %721 = vperm.xlu1 (!%p190_p2), %2508, %v492_v3   ;;  %716 = vperm.xlu0 (!%p190_p2), %2507, %v491_v4   ;;  %v471_v15 = vld [vmem:[%s3189_s4 + $0xe0] sm:$0xff] (!%p190_p2)  ;;  %v470_v16 = vld [vmem:[%s3189_s4 + $0xd0] sm:$0xff] (!%p190_p2)  ;;  %v486_v26 = vld [vmem:[%s3189_s4 + $0x178] sm:$0x1] (!%p190_p2) }
   0xc   : > { %2305 = vmatprep.subr.msk.mxu1 (!%p190_p2), %vm833_vm0, %v2132_v11  ;;  %2361 = vmatprep.subr.msk.mxu0 (!%p190_p2), %vm833_vm0, %v2601_v14  ;;  %v479_v19 = vld [vmem:[%s3189_s4 + $0x140] sm:$0xff] (!%p190_p2)  ;;  %v481_v21 = vld [vmem:[%s3189_s4 + $0x150] sm:$0xff] (!%p190_p2)  ;;  %v488_v31 = vld [vmem:[%s3189_s4 + $0x188] sm:$0x1] (!%p190_p2) }
   0xd   : > { %2306 = vmatpush3.msk.msra.mxu1 %vm833_vm0, %v2132_v11  ;;  %2362 = vmatpush3.msk.msra.mxu0 %vm833_vm0, %v2601_v14  ;;  %v473_v22 = vld [vmem:[%s3189_s4 + $0x100] sm:$0xff]  ;;  %v472_v23 = vld [vmem:[%s3189_s4 + $0xf0] sm:$0xff]  ;;  %v490_v33 = vld [vmem:[%s3189_s4 + $0x198] sm:$0x1]  ;;  %s3192_s11 = smov (!%p219_p3, %s2126_s11), 7  ;;  %s3194_s19 = smov (!%p225_p4, %s2554_s19), 1 }
   0xe   : > { %2375 = vmatprep.subr.msk.mxu0 %vm833_vm0, %v2617_v17  ;;  %v483_v25 = vld [vmem:[%s3189_s4 + $0x160] sm:$0xff]  ;;  %v485_v27 = vld [vmem:[%s3189_s4 + $0x170] sm:$0xff]  ;;  %v449_v39 = vld [vmem:[%s3189_s4 + $0x8] sm:$0x1]  ;;  %s2497_s14 = smul.u32 144, %s3192_s11  ;;  %s2223_s9 = sshll.u32 %s3194_s19, 6 }
   0xf   : > { %726 = vperm.xlu1 %2508, %v493_v5   ;;  %601 = vperm.xlu0 %2507, %v468_v6   ;;  %v450_v28 = vld [vmem:[%s3189_s4 + $0x10] sm:$0xff]  ;;  %v448_v29 = vld [vmem:[%s3189_s4] sm:$0xff]  ;;  %v451_v41 = vld [vmem:[%s3189_s4 + $0x18] sm:$0x1]  ;;  %s229_s12 = scalar_lea.vmem %s3190_s5, %s2223_s9 }
  0x10   : > { %v2660_v30 = vld [vmem:[%s3186_s1] sm:$0xf]  ;;  %v489_v34 = vld [vmem:[%s3189_s4 + $0x190] sm:$0xff]  ;;  %v455_v43 = vld [vmem:[%s3189_s4 + $0x38] sm:$0x1]  ;;  %s2743_s17 = scalar_lea.vmem %s3185_s0, %s2497_s14 }
  0x11   : > { %v487_v32 = vld [vmem:[%s3189_s4 + $0x180] sm:$0xff]  ;;  %2319 = vmatprep.subr.msk.mxu1 %vm833_vm0, %v2660_v30  ;;  %v454_v35 = vld [vmem:[%s3189_s4 + $0x30] sm:$0xff]  ;;  %v453_v44 = vld [vmem:[%s3189_s4 + $0x28] sm:$0x1] }
  0x12   : > { %v452_v36 = vld [vmem:[%s3189_s4 + $0x20] sm:$0xff]  ;;  %v458_v37 = vld [vmem:[%s3189_s4 + $0x50] sm:$0xff]  ;;  %v457_v46 = vld [vmem:[%s3189_s4 + $0x48] sm:$0x1] }
  0x13   : > { %636 = vperm.xlu1 %2508, %v475_v7   ;;  %606 = vperm.xlu0 %2507, %v469_v8   ;;  %v456_v38 = vld [vmem:[%s3189_s4 + $0x40] sm:$0xff]  ;;  %v462_v42 = vld [vmem:[%s3189_s4 + $0x70] sm:$0xff]  ;;  %v461_v47 = vld [vmem:[%s3189_s4 + $0x68] sm:$0x1] }
  0x14   : > { %v460_v40 = vld [vmem:[%s3189_s4 + $0x60] sm:$0xff]  ;;  %v459_v48 = vld [vmem:[%s3189_s4 + $0x58] sm:$0x1]  ;;  %v474_v49 = vld [vmem:[%s3189_s4 + $0x110] sm:$0xff] }
  0x15   : > { %v464_v45 = vld [vmem:[%s3189_s4 + $0x80] sm:$0xff]  ;;  %v463_v50 = vld [vmem:[%s3189_s4 + $0x78] sm:$0x1]  ;;  %v495_v52 = vld [vmem:[%s3189_s4 + $0x1f0] sm:$0xff] }
  0x16   : > { %v496_v51 = vld [vmem:[%s3189_s4 + $0x200] sm:$0xff]  ;;  %v497_v53 = vld [vmem:[%s3189_s4 + $0x210] sm:$0xff]  ;;  %v465_v54 = vld [vmem:[%s3189_s4 + $0x88] sm:$0x1] }
  0x17   : > { %731 = vperm.xlu1 %2508, %v494_v9   ;;  %641 = vperm.xlu0 %2507, %v476_v10   ;;  %v498_v55 = vld [vmem:[%s3189_s4 + $0x220] sm:$0xff]  ;;  %v248_v58 = vld [vmem:[%s2743_s17 + $0x90] sm:$0xff] }
  0x18   : > { %v249_v56 = vld [vmem:[%s2743_s17 + $0xa0] sm:$0xff]  ;;  %v273_v63 = vld [vmem:[%s2743_s17 + $0x1b0] sm:$0xff] }
  0x19   : > { %v2749_v57 = vld [vmem:[%s3187_s2] ss:$0 sm:$0xff]  ;;  %v275_v4 = vld [vmem:[%s2743_s17 + $0x1d0] sm:$0xff] }
  0x1a   : > { %v308_v59 = vmul.f32 %v2749_v57, %v249_v56  ;;  %v307_v60 = vmul.f32 %v2749_v57, %v248_v58  ;;  %v274_v61 = vld [vmem:[%s2743_s17 + $0x1c0] sm:$0xff]  ;;  %v332_v3 = vmul.f32 %v2749_v57, %v273_v63  ;;  %v250_v5 = vld [vmem:[%s2743_s17 + $0xb0] sm:$0xff]  ;;  %v334_v7 = vmul.f32 %v2749_v57, %v275_v4 }
  0x1b   : > { %651 = vperm.xlu1 %2508, %v478_v12   ;;  %646 = vperm.xlu0 %2507, %v477_v13   ;;  %v2758_v62 = vld [vmem:[%s3188_s3] ss:$0 sm:$0xff]  ;;  %v333_v0 = vmul.f32 %v2749_v57, %v274_v61  ;;  %v309_v11 = vmul.f32 %v2749_v57, %v250_v5 }
  0x1c   : > { %v365_v1 = vadd.f32 %v2758_v62, %v308_v59  ;;  %v364_v2 = vadd.f32 %v2758_v62, %v307_v60  ;;  %v389_v10 = vadd.f32 %v2758_v62, %v332_v3  ;;  %v251_v12 = vld [vmem:[%s2743_s17 + $0xc0] sm:$0xff]  ;;  %v262_v60 = vld [vmem:[%s2743_s17 + $0x148] sm:$0x1] }
  0x1d   : > { %v390_v6 = vadd.f32 %v2758_v62, %v333_v0  ;;  %v321_v3 = vmul.f32 %v2749_v57, %v262_v60 }
  0x1e   : > { %v416_v8 = vmax.f32 %v365_v1, 0.0  ;;  %v415_v9 = vmax.f32 %v364_v2, 0.0  ;;  %v261_v1 = vld [vmem:[%s2743_s17 + $0x140] sm:$0xff] }
  0x1f   : > { %616 = vperm.xlu1 %2508, %v471_v15   ;;  %611 = vperm.xlu0 %2507, %v470_v16   ;;  %v441_v16 = vmax.f32 %v390_v6, 0.0 }
  0x23   : > { %661 = vperm.xlu1 %2508, %v480_v18   ;;  %656 = vperm.xlu0 %2507, %v479_v19   ;;  %v391_v18 = vadd.f32 %v2758_v62, %v334_v7  ;;  %v257_v19 = vld [vmem:[%s2743_s17 + $0x120] sm:$0xff] }
  0x27   : > { %671 = vperm.xlu1 %2508, %v482_v20   ;;  %666 = vperm.xlu0 %2507, %v481_v21   ;;  %v310_v20 = vmul.f32 %v2749_v57, %v251_v12 }
  0x2b   : > { %626 = vperm.xlu1 %2508, %v473_v22   ;;  %621 = vperm.xlu0 %2507, %v472_v23   ;;  %v440_v23 = vmax.f32 %v389_v10, 0.0 }
  0x2f   : > { %681 = vperm.xlu1 %2508, %v484_v24   ;;  %676 = vperm.xlu0 %2507, %v483_v25   ;;  %v366_v24 = vadd.f32 %v2758_v62, %v309_v11  ;;  %v276_v25 = vld [vmem:[%s2743_s17 + $0x1e0] sm:$0xff] }
  0x33   : > { %691 = vperm.xlu1 %2508, %v486_v26   ;;  %686 = vperm.xlu0 %2507, %v485_v27   ;;  %v258_v26 = vld [vmem:[%s2743_s17 + $0x128] sm:$0x1]  ;;  %v316_v27 = vmul.f32 %v2749_v57, %v257_v19  ;;  %v378_v19 = vadd.f32 %v2758_v62, %v321_v3 }
  0x37   : > { %511 = vperm.xlu1 %2508, %v450_v28   ;;  %501 = vperm.xlu0 %2507, %v448_v29   ;;  %v2785_v28 = vld [vmem:[%s3186_s1 + $0x8] sm:$0xf] }
  0x3b   : > { %701 = vperm.xlu1 %2508, %v488_v31   ;;  %696 = vperm.xlu0 %2507, %v487_v32   ;;  %v442_v32 = vmax.f32 %v391_v18, 0.0 }
  0x3f   : > { %711 = vperm.xlu1 %2508, %v490_v33   ;;  %706 = vperm.xlu0 %2507, %v489_v34   ;;  %v367_v33 = vadd.f32 %v2758_v62, %v310_v20  ;;  %v335_v34 = vmul.f32 %v2749_v57, %v276_v25 }
  0x43   : > { %531 = vperm.xlu1 %2508, %v454_v35   ;;  %521 = vperm.xlu0 %2507, %v452_v36  }
  0x47   : > { %551 = vperm.xlu1 %2508, %v458_v37   ;;  %541 = vperm.xlu0 %2507, %v456_v38   ;;  %v417_v37 = vmax.f32 %v366_v24, 0.0  ;;  %v317_v38 = vmul.f32 %v2749_v57, %v258_v26 }
  0x4b   : > { %506 = vperm.xlu1 %2508, %v449_v39   ;;  %561 = vperm.xlu0 %2507, %v460_v40   ;;  %v260_v39 = vld [vmem:[%s2743_s17 + $0x138] sm:$0x1]  ;;  %v259_v40 = vld [vmem:[%s2743_s17 + $0x130] sm:$0xff] }
  0x4f   : > { %516 = vperm.xlu1 %2508, %v451_v41   ;;  %571 = vperm.xlu0 %2507, %v462_v42   ;;  %v373_v41 = vadd.f32 %v2758_v62, %v316_v27  ;;  %v2803_v42 = vld [vmem:[%s3186_s1 + $0x18] sm:$0xf] }
  0x53   : > { %536 = vperm.xlu1 %2508, %v455_v43   ;;  %526 = vperm.xlu0 %2507, %v453_v44  }
  0x57   : > { %581 = vperm.xlu1 %2508, %v464_v45   ;;  %546 = vperm.xlu0 %2507, %v457_v46   ;;  %v392_v45 = vadd.f32 %v2758_v62, %v335_v34  ;;  %v319_v46 = vmul.f32 %v2749_v57, %v260_v39  ;;  %v254_v34 = vld [vmem:[%s2743_s17 + $0xf0] sm:$0xff] }
  0x59   : > { %v376_v56 = vadd.f32 %v2758_v62, %v319_v46 }
  0x5b   : > { %566 = vperm.xlu1 %2508, %v461_v47   ;;  %556 = vperm.xlu0 %2507, %v459_v48   ;;  %v427_v6 = vmax.f32 %v376_v56, 0.0 }
  0x5f   : > { %631 = vperm.xlu1 %2508, %v474_v49   ;;  %576 = vperm.xlu0 %2507, %v463_v50   ;;  %v374_v49 = vadd.f32 %v2758_v62, %v317_v38  ;;  %v318_v50 = vmul.f32 %v2749_v57, %v259_v40 }
  0x61   : > { %v425_v63 = vmax.f32 %v374_v49, 0.0  ;;  %v375_v0 = vadd.f32 %v2758_v62, %v318_v50  ;;  %v313_v49 = vmul.f32 %v2749_v57, %v254_v34  ;;  %v265_v50 = vld [vmem:[%s2743_s17 + $0x160] sm:$0xff] }
  0x63   : > { %741 = vperm.xlu1 %2508, %v496_v51   ;;  %736 = vperm.xlu0 %2507, %v495_v52   ;;  %v253_v51 = vld [vmem:[%s2743_s17 + $0xe0] sm:$0xff]  ;;  %v252_v52 = vld [vmem:[%s2743_s17 + $0xd0] sm:$0xff]  ;;  %v426_v11 = vmax.f32 %v375_v0, 0.0 }
  0x64   : > { %v312_v58 = vmul.f32 %v2749_v57, %v253_v51  ;;  %v311_v59 = vmul.f32 %v2749_v57, %v252_v52  ;;  %v2866_v51 = vld [vmem:[%s3186_s1 + $0x1c] sm:$0xf]  ;;  %v267_v0 = vld [vmem:[%s2743_s17 + $0x170] sm:$0xff] }
  0x66   : > { %v369_v7 = vadd.f32 %v2758_v62, %v312_v58  ;;  %v368_v12 = vadd.f32 %v2758_v62, %v311_v59  ;;  %v324_v58 = vmul.f32 %v2749_v57, %v265_v50 }
  0x67   : > { %746 = vperm.xlu1 %2508, %v497_v53   ;;  %586 = vperm.xlu0 %2507, %v465_v54   ;;  %v424_v53 = vmax.f32 %v373_v41, 0.0 }
  0x6b   : > { %751 = vperm.xlu0 %2507, %v498_v55  }
  0x86   : > { %v597_v13 = vpop.permute.xlu1 %596  ;;  %v592_v15 = vpop.permute.xlu0 %591 }
  0x87   : > { %v2775_v21 = vmul.f32 %v597_v13, %v416_v8  ;;  %v772_v22 = vmul.f32 %v592_v15, %v415_v9  ;;  %v320_v8 = vmul.f32 %v2749_v57, %v261_v1  ;;  %v264_v13 = vld [vmem:[%s2743_s17 + $0x158] sm:$0x1]  ;;  %v263_v15 = vld [vmem:[%s2743_s17 + $0x150] sm:$0xff] }
  0x88   : > { %v323_v25 = vmul.f32 %v2749_v57, %v264_v13  ;;  %v322_v26 = vmul.f32 %v2749_v57, %v263_v15 }
  0x89   : > { %2307 = vmatprep.mubr.msk.f32.mxu1 %vm808_vm1, %v772_v22  ;;  %v377_v24 = vadd.f32 %v2758_v62, %v320_v8  ;;  %v381_v8 = vadd.f32 %v2758_v62, %v324_v58 }
  0x8a   : > { %v722_v29 = vpop.permute.xlu1 %721  ;;  %v717_v31 = vpop.permute.xlu0 %716  ;;  %2308 = vmatmul.mubr.msk.f32.vlgmr.msra.gmra.mrb[0].mxu1 %vm808_vm1, %v2775_v21  ;;  %v380_v41 = vadd.f32 %v2758_v62, %v323_v25 }
  0x8b   : > { %v798_v35 = vmul.f32 %v722_v29, %v441_v16  ;;  %v797_v36 = vmul.f32 %v717_v31, %v440_v23  ;;  %2320 = vmatpush3.msk.msra.mxu1 %vm833_vm0, %v2660_v30  ;;  %v418_v30 = vmax.f32 %v367_v33, 0.0  ;;  %v420_v23 = vmax.f32 %v369_v7, 0.0  ;;  %v255_v33 = vld [vmem:[%s2743_s17 + $0x100] sm:$0xff] }
  0x8c   : > { %2333 = vmatprep.subr.msk.mxu1 %vm833_vm0, %v2785_v28  ;;  %v428_v40 = vmax.f32 %v377_v24, 0.0  ;;  %v432_v25 = vmax.f32 %v381_v8, 0.0 }
  0x8d   : > { %2363 = vmatprep.mubr.msk.f32.mxu0 %vm808_vm1, %v797_v36 }
  0x8e   : > { %v727_v43 = vpop.permute.xlu1 %726  ;;  %v602_v44 = vpop.permute.xlu0 %601  ;;  %2364 = vmatmul.mubr.msk.f32.vlgmr.msra.gmra.mrb[0].mxu0 %vm808_vm1, %v798_v35 }
  0x8f   : > { %v799_v47 = vmul.f32 %v727_v43, %v442_v32  ;;  %v2808_v48 = vmul.f32 %v602_v44, %v417_v37  ;;  %2376 = vmatpush3.msk.msra.mxu0 %vm833_vm0, %v2617_v17  ;;  %v443_v17 = vmax.f32 %v392_v45, 0.0  ;;  %v419_v32 = vmax.f32 %v368_v12, 0.0 }
  0x90   : > { %2389 = vmatprep.subr.msk.mxu0 %vm833_vm0, %v2803_v42  ;;  %v429_v37 = vmax.f32 %v378_v19, 0.0  ;;  %v379_v43 = vadd.f32 %v2758_v62, %v322_v26  ;;  %v314_v44 = vmul.f32 %v2749_v57, %v255_v33 }
  0x91   : > { %2310 = vmatprep.mubr.msk.f32.mxu1 %vm808_vm1, %v2808_v48  ;;  %2366 = vmatprep.mubr.msk.f32.mxu0 %vm808_vm1, %v799_v47 }
  0x92   : > { %v637_v54 = vpop.permute.xlu1 %636  ;;  %v607_v55 = vpop.permute.xlu0 %606  ;;  %v371_v56 = vadd.f32 %v2758_v62, %v314_v44 }
  0x93   : > { %v2825_v61 = vmul.f32 %v607_v55, %v418_v30  ;;  %v2829_v2 = vmul.f32 %v637_v54, %v424_v53  ;;  %v266_v30 = vld [vmem:[%s2743_s17 + $0x168] sm:$0x1]  ;;  %v431_v55 = vmax.f32 %v380_v41, 0.0 }
  0x94   : > { %v325_v52 = vmul.f32 %v2749_v57, %v266_v30  ;;  %v422_v7 = vmax.f32 %v371_v56, 0.0 }
  0x95   : > { %2311 = vmatmul.mubr.msk.f32.gmra.mrb[2].mxu1 %vm808_vm1, %v2825_v61  ;;  %v1533_v16 = vrot.slane %v2829_v2, 1 }
  0x96   : > { %v732_v4 = vpop.permute.xlu1 %731  ;;  %v642_v5 = vpop.permute.xlu0 %641 }
  0x97   : > { %v800_v9 = vmul.f32 %v732_v4, %v443_v17  ;;  %v782_v10 = vmul.f32 %v642_v5, %v425_v63  ;;  %v430_v17 = vmax.f32 %v379_v43, 0.0  ;;  %v370_v63 = vadd.f32 %v2758_v62, %v313_v49 }
  0x98   : > { %v382_v4 = vadd.f32 %v2758_v62, %v325_v52  ;;  %v272_v52 = vld [vmem:[%s2743_s17 + $0x198] sm:$0x1] }
  0x99   : > { %v1534_v18 = vrot.slane %v782_v10, 1  ;;  %2367 = vmatmul.mubr.msk.f32.gmra.mrb[2].mxu0 %vm808_vm1, %v800_v9  ;;  %v326_v10 = vmul.f32 %v2749_v57, %v267_v0  ;;  %v421_v15 = vmax.f32 %v370_v63, 0.0 }
  0x9a   : > { %v652_v20 = vpop.permute.xlu1 %651  ;;  %v647_v22 = vpop.permute.xlu0 %646 }
  0x9b   : > { %v784_v27 = vmul.f32 %v652_v20, %v427_v6  ;;  %v2845_v29 = vmul.f32 %v647_v22, %v426_v11  ;;  %v1535_v31 = vsel %vm1082_vm2, %v1533_v16, %v1534_v18  ;;  %v232_v16 = vld [vmem:[%s2743_s17 + $0x10] sm:$0xff]  ;;  %v230_v18 = vld [vmem:[%s2743_s17] sm:$0xff]  ;;  %v433_v22 = vmax.f32 %v382_v4, 0.0 }
  0x9c   : > { %2377 = vmatprep.mubr.msk.f32.mxu0 %vm808_vm1, %v1535_v31  ;;  %v291_v31 = vmul.f32 %v2749_v57, %v232_v16 }
  0x9d   : > { %v1537_v35 = vrot.slane %v784_v27, 1  ;;  %v1536_v36 = vrot.slane %v2845_v29, 1  ;;  %v383_v27 = vadd.f32 %v2758_v62, %v326_v10 }
  0x9e   : > { %v617_v38 = vpop.permute.xlu1 %616  ;;  %v612_v39 = vpop.permute.xlu0 %611  ;;  %v348_v43 = vadd.f32 %v2758_v62, %v291_v31  ;;  %v2951_v31 = vld [vmem:[%s3186_s1 + $0xc] sm:$0xf] }
  0x9f   : > { %v1538_v45 = vsel %vm1082_vm2, %v1536_v36, %v1537_v35  ;;  %v2857_v46 = vmul.f32 %v617_v38, %v420_v23  ;;  %v2859_v47 = vmul.f32 %v612_v39, %v419_v32  ;;  %v270_v32 = vld [vmem:[%s2743_s17 + $0x188] sm:$0x1]  ;;  %v289_v36 = vmul.f32 %v2749_v57, %v230_v18 }
  0xa0   : > { %2378 = vmatmul.mubr.msk.f32.vlgmr.msra.gmra.mrb[0].mxu0 %vm808_vm1, %v1538_v45  ;;  %v329_v38 = vmul.f32 %v2749_v57, %v270_v32  ;;  %v434_v49 = vmax.f32 %v383_v27, 0.0 }
  0xa1   : > { %2313 = vmatprep.mubr.msk.f32.mxu1 %vm808_vm1, %v2859_v47  ;;  %2390 = vmatpush3.msk.msra.mxu0 %vm833_vm0, %v2803_v42  ;;  %v268_v42 = vld [vmem:[%s2743_s17 + $0x178] sm:$0x1]  ;;  %v346_v50 = vadd.f32 %v2758_v62, %v289_v36 }
  0xa2   : > { %v662_v53 = vpop.permute.xlu1 %661  ;;  %v657_v54 = vpop.permute.xlu0 %656  ;;  %2314 = vmatmul.mubr.msk.f32.gmra.mrb[4].mxu1 %vm808_vm1, %v2857_v46  ;;  %2403 = vmatprep.subr.msk.mxu0 %vm833_vm0, %v2866_v51  ;;  %v327_v9 = vmul.f32 %v2749_v57, %v268_v42  ;;  %v386_v56 = vadd.f32 %v2758_v62, %v329_v38  ;;  %v331_v42 = vmul.f32 %v2749_v57, %v272_v52 }
  0xa3   : > { %v786_v59 = vmul.f32 %v662_v53, %v429_v37  ;;  %v2880_v60 = vmul.f32 %v657_v54, %v428_v40  ;;  %v269_v37 = vld [vmem:[%s2743_s17 + $0x180] sm:$0xff]  ;;  %v271_v53 = vld [vmem:[%s2743_s17 + $0x190] sm:$0xff] }
  0xa4   : > { %v384_v26 = vadd.f32 %v2758_v62, %v327_v9  ;;  %v328_v44 = vmul.f32 %v2749_v57, %v269_v37  ;;  %v330_v0 = vmul.f32 %v2749_v57, %v271_v53  ;;  %v437_v10 = vmax.f32 %v386_v56, 0.0 }
  0xa5   : > { %v1540_v1 = vrot.slane %v786_v59, 1  ;;  %v1539_v3 = vrot.slane %v2880_v60, 1  ;;  %v388_v16 = vadd.f32 %v2758_v62, %v331_v42 }
  0xa6   : > { %v672_v5 = vpop.permute.xlu1 %671  ;;  %v667_v6 = vpop.permute.xlu0 %666  ;;  %v435_v41 = vmax.f32 %v384_v26, 0.0  ;;  %v385_v63 = vadd.f32 %v2758_v62, %v328_v44  ;;  %v387_v18 = vadd.f32 %v2758_v62, %v330_v0  ;;  %v238_v26 = vld [vmem:[%s2743_s17 + $0x40] sm:$0xff]  ;;  %v231_v44 = vld [vmem:[%s2743_s17 + $0x8] sm:$0x1]  ;;  %v233_v0 = vld [vmem:[%s2743_s17 + $0x18] sm:$0x1] }
  0xa7   : > { %v788_v11 = vmul.f32 %v672_v5, %v431_v55  ;;  %v2890_v12 = vmul.f32 %v667_v6, %v430_v17  ;;  %v1541_v13 = vsel %vm1082_vm2, %v1539_v3, %v1540_v1  ;;  %v399_v17 = vmax.f32 %v348_v43, 0.0  ;;  %v236_v6 = vld [vmem:[%s2743_s17 + $0x30] sm:$0xff] }
  0xa8   : > { %2380 = vmatprep.mubr.msk.f32.mxu0 %vm808_vm1, %v1541_v13  ;;  %v397_v5 = vmax.f32 %v346_v50, 0.0  ;;  %v439_v36 = vmax.f32 %v388_v16, 0.0  ;;  %v297_v38 = vmul.f32 %v2749_v57, %v238_v26 }
  0xa9   : > { %v1543_v19 = vrot.slane %v788_v11, 1  ;;  %v1542_v20 = vrot.slane %v2890_v12, 1 }
  0xaa   : > { %v627_v23 = vpop.permute.xlu1 %626  ;;  %v622_v24 = vpop.permute.xlu0 %621  ;;  %v354_v56 = vadd.f32 %v2758_v62, %v297_v38 }
  0xab   : > { %v2901_v33 = vmul.f32 %v627_v23, %v422_v7  ;;  %v2903_v34 = vmul.f32 %v622_v24, %v421_v15  ;;  %v1544_v35 = vsel %vm1082_vm2, %v1542_v20, %v1543_v19  ;;  %v234_v7 = vld [vmem:[%s2743_s17 + $0x20] sm:$0xff]  ;;  %v436_v15 = vmax.f32 %v385_v63, 0.0  ;;  %v240_v20 = vld [vmem:[%s2743_s17 + $0x50] sm:$0xff] }
  0xac   : > { %2381 = vmatmul.mubr.msk.f32.gmra.mrb[2].mxu0 %vm808_vm1, %v1544_v35  ;;  %v295_v19 = vmul.f32 %v2749_v57, %v236_v6  ;;  %v299_v27 = vmul.f32 %v2749_v57, %v240_v20 }
  0xad   : > { %2316 = vmatprep.mubr.msk.f32.mxu1 %vm808_vm1, %v2903_v34 }
  0xae   : > { %v682_v39 = vpop.permute.xlu1 %681  ;;  %v677_v40 = vpop.permute.xlu0 %676  ;;  %2317 = vmatmul.mubr.msk.f32.gmra.mrb[6].mxu1 %vm808_vm1, %v2901_v33  ;;  %v352_v37 = vadd.f32 %v2758_v62, %v295_v19  ;;  %v356_v52 = vadd.f32 %v2758_v62, %v299_v27 }
  0xaf   : > { %v790_v30 = vmul.f32 %v682_v39, %v433_v22  ;;  %v2916_v45 = vmul.f32 %v677_v40, %v432_v25  ;;  %v293_v25 = vmul.f32 %v2749_v57, %v234_v7 }
  0xb0   : > { %v407_v6 = vmax.f32 %v356_v52, 0.0 }
  0xb1   : > { %v1546_v54 = vrot.slane %v790_v30, 1  ;;  %v1545_v55 = vrot.slane %v2916_v45, 1  ;;  %v350_v43 = vadd.f32 %v2758_v62, %v293_v25  ;;  %v242_v30 = vld [vmem:[%s2743_s17 + $0x60] sm:$0xff] }
  0xb2   : > { %v692_v58 = vpop.permute.xlu1 %691  ;;  %v687_v59 = vpop.permute.xlu0 %686 }
  0xb3   : > { %v792_v1 = vmul.f32 %v692_v58, %v435_v41  ;;  %v2926_v3 = vmul.f32 %v687_v59, %v434_v49  ;;  %v1547_v4 = vsel %vm1082_vm2, %v1545_v55, %v1546_v54  ;;  %v438_v41 = vmax.f32 %v387_v18, 0.0 }
  0xb4   : > { %2383 = vmatprep.mubr.msk.f32.mxu0 %vm808_vm1, %v1547_v4  ;;  %v403_v55 = vmax.f32 %v352_v37, 0.0  ;;  %v290_v58 = vmul.f32 %v2749_v57, %v231_v44  ;;  %v401_v42 = vmax.f32 %v350_v43, 0.0  ;;  %v246_v43 = vld [vmem:[%s2743_s17 + $0x80] sm:$0xff]  ;;  %v239_v44 = vld [vmem:[%s2743_s17 + $0x48] sm:$0x1] }
  0xb5   : > { %v1549_v8 = vrot.slane %v792_v1, 1  ;;  %v1548_v9 = vrot.slane %v2926_v3, 1  ;;  %v244_v1 = vld [vmem:[%s2743_s17 + $0x70] sm:$0xff] }
  0xb6   : > { %v512_v11 = vpop.permute.xlu1 %511  ;;  %v502_v13 = vpop.permute.xlu0 %501  ;;  %v303_v20 = vmul.f32 %v2749_v57, %v244_v1 }
  0xb7   : > { %v2937_v22 = vmul.f32 %v512_v11, %v399_v17  ;;  %v2939_v23 = vmul.f32 %v502_v13, %v397_v5  ;;  %v1550_v24 = vsel %vm1082_vm2, %v1548_v9, %v1549_v8  ;;  %v405_v9 = vmax.f32 %v354_v56, 0.0 }
  0xb8   : > { %2384 = vmatmul.mubr.msk.f32.gmra.mrb[4].mxu0 %vm808_vm1, %v1550_v24  ;;  %v292_v13 = vmul.f32 %v2749_v57, %v233_v0  ;;  %v235_v24 = vld [vmem:[%s2743_s17 + $0x28] sm:$0x1] }
  0xb9   : > { %2321 = vmatprep.mubr.msk.f32.mxu1 %vm808_vm1, %v2939_v23 }
  0xba   : > { %v702_v32 = vpop.permute.xlu1 %701  ;;  %v697_v35 = vpop.permute.xlu0 %696  ;;  %2322 = vmatmul.mubr.msk.f32.vlgmr.msra.gmra.mrb[0].mxu1 %vm808_vm1, %v2937_v22 }
  0xbb   : > { %v794_v39 = vmul.f32 %v702_v32, %v437_v10  ;;  %v2957_v40 = vmul.f32 %v697_v35, %v436_v15  ;;  %2334 = vmatpush3.msk.msra.mxu1 %vm833_vm0, %v2785_v28  ;;  %v301_v28 = vmul.f32 %v2749_v57, %v242_v30  ;;  %v347_v10 = vadd.f32 %v2758_v62, %v290_v58  ;;  %v237_v15 = vld [vmem:[%s2743_s17 + $0x38] sm:$0x1]  ;;  %v3011_v30 = vld [vmem:[%s3186_s1 + $0x20] sm:$0xf] }
  0xbc   : > { %2347 = vmatprep.subr.msk.mxu1 %vm833_vm0, %v2951_v31  ;;  %v296_v25 = vmul.f32 %v2749_v57, %v237_v15  ;;  %v349_v35 = vadd.f32 %v2758_v62, %v292_v13  ;;  %v245_v15 = vld [vmem:[%s2743_s17 + $0x78] sm:$0x1] }
  0xbd   : > { %v1552_v49 = vrot.slane %v794_v39, 1  ;;  %v1551_v50 = vrot.slane %v2957_v40, 1  ;;  %v358_v11 = vadd.f32 %v2758_v62, %v301_v28  ;;  %v398_v32 = vmax.f32 %v347_v10, 0.0 }
  0xbe   : > { %v712_v53 = vpop.permute.xlu1 %711  ;;  %v707_v54 = vpop.permute.xlu0 %706 }
  0xbf   : > { %v796_v59 = vmul.f32 %v712_v53, %v439_v36  ;;  %v2971_v17 = vmul.f32 %v707_v54, %v438_v41  ;;  %v1553_v63 = vsel %vm1082_vm2, %v1551_v50, %v1552_v49  ;;  %v294_v36 = vmul.f32 %v2749_v57, %v235_v24 }
  0xc0   : > { %2386 = vmatprep.mubr.msk.f32.mxu0 %vm808_vm1, %v1553_v63  ;;  %v409_v39 = vmax.f32 %v358_v11, 0.0  ;;  %v360_v41 = vadd.f32 %v2758_v62, %v303_v20  ;;  %v353_v49 = vadd.f32 %v2758_v62, %v296_v25  ;;  %v400_v53 = vmax.f32 %v349_v35, 0.0  ;;  %v243_v63 = vld [vmem:[%s2743_s17 + $0x68] sm:$0x1] }
  0xc1   : > { %v1555_v4 = vrot.slane %v796_v59, 1  ;;  %v1554_v5 = vrot.slane %v2971_v17, 1  ;;  %v351_v54 = vadd.f32 %v2758_v62, %v294_v36  ;;  %v298_v59 = vmul.f32 %v2749_v57, %v239_v44 }
  0xc2   : > { %v532_v7 = vpop.permute.xlu1 %531  ;;  %v522_v8 = vpop.permute.xlu0 %521  ;;  %v411_v28 = vmax.f32 %v360_v41, 0.0  ;;  %v404_v0 = vmax.f32 %v353_v49, 0.0 }
  0xc3   : > { %v2982_v16 = vmul.f32 %v532_v7, %v403_v55  ;;  %v2984_v18 = vmul.f32 %v522_v8, %v401_v42  ;;  %v1556_v19 = vsel %vm1082_vm2, %v1554_v5, %v1555_v4  ;;  %v305_v55 = vmul.f32 %v2749_v57, %v246_v43  ;;  %v241_v42 = vld [vmem:[%s2743_s17 + $0x58] sm:$0x1] }
  0xc4   : > { %2387 = vmatmul.mubr.msk.f32.gmra.mrb[6].mxu0 %vm808_vm1, %v1556_v19  ;;  %v402_v5 = vmax.f32 %v351_v54, 0.0  ;;  %v302_v7 = vmul.f32 %v2749_v57, %v243_v63  ;;  %v300_v8 = vmul.f32 %v2749_v57, %v241_v42  ;;  %v355_v13 = vadd.f32 %v2758_v62, %v298_v59  ;;  %v256_v42 = vld [vmem:[%s2743_s17 + $0x110] sm:$0xff] }
  0xc5   : > { %2324 = vmatprep.mubr.msk.f32.mxu1 %vm808_vm1, %v2984_v18  ;;  %2391 = vmatprep.mubr.msk.f32.mxu0 %vm808_vm1, %v2937_v22  ;;  %v1086_v19 = vrot.slane %v2937_v22, 1  ;;  %v304_v22 = vmul.f32 %v2749_v57, %v245_v15  ;;  %v1092_v43 = vrot.slane %v2982_v16, 1  ;;  %v1089_v44 = vrot.slane %v2984_v18, 1 }
  0xc6   : > { %v552_v26 = vpop.permute.xlu1 %551  ;;  %v542_v27 = vpop.permute.xlu0 %541  ;;  %2325 = vmatmul.mubr.msk.f32.gmra.mrb[2].mxu1 %vm808_vm1, %v2982_v16  ;;  %v406_v41 = vmax.f32 %v355_v13, 0.0 }
  0xc7   : > { %v2999_v37 = vmul.f32 %v552_v26, %v407_v6  ;;  %v3001_v38 = vmul.f32 %v542_v27, %v405_v9  ;;  %v362_v6 = vadd.f32 %v2758_v62, %v305_v55  ;;  %v1083_v9 = vrot.slane %v2939_v23, 1 }
  0xc8   : > { %2392 = vmatmul.mubr.msk.f32.vlgmr.msra.gmra.mrb[0].mxu0 %vm808_vm1, %v2984_v18  ;;  %v359_v27 = vadd.f32 %v2758_v62, %v302_v7 }
  0xc9   : > { %2327 = vmatprep.mubr.msk.f32.mxu1 %vm808_vm1, %v3001_v38  ;;  %2394 = vmatprep.mubr.msk.f32.mxu0 %vm808_vm1, %v2982_v16  ;;  %v413_v26 = vmax.f32 %v362_v6, 0.0  ;;  %v1098_v7 = vrot.slane %v2999_v37, 1 }
  0xca   : > { %v507_v50 = vpop.permute.xlu1 %506  ;;  %v562_v52 = vpop.permute.xlu0 %561  ;;  %2328 = vmatmul.mubr.msk.f32.gmra.mrb[4].mxu1 %vm808_vm1, %v2999_v37  ;;  %2404 = vmatpush3.msk.msra.mxu0 %vm833_vm0, %v2866_v51  ;;  %v410_v54 = vmax.f32 %v359_v27, 0.0  ;;  %v279_v27 = vld [vmem:[%s2743_s17 + $0x210] sm:$0xff] }
  0xcb   : > { %v755_v56 = vmul.f32 %v507_v50, %v398_v32  ;;  %v3024_v58 = vmul.f32 %v562_v52, %v409_v39  ;;  %2417 = vmatprep.subr.msk.mxu0 %vm833_vm0, %v3011_v30  ;;  %v357_v32 = vadd.f32 %v2758_v62, %v300_v8 }
  0xcc   : > { %2395 = vmatmul.mubr.msk.f32.gmra.mrb[2].mxu0 %vm808_vm1, %v3001_v38 }
  0xcd   : > { %v1084_v51 = vrot.slane %v755_v56, 1  ;;  %2330 = vmatprep.mubr.msk.f32.mxu1 %vm808_vm1, %v3024_v58  ;;  %2397 = vmatprep.mubr.msk.f32.mxu0 %vm808_vm1, %v2999_v37  ;;  %v408_v55 = vmax.f32 %v357_v32, 0.0  ;;  %v361_v56 = vadd.f32 %v2758_v62, %v304_v22  ;;  %v1101_v8 = vrot.slane %v3024_v58, 1  ;;  %v280_v22 = vld [vmem:[%s2743_s17 + $0x220] sm:$0xff] }
  0xce   : > { %v517_v1 = vpop.permute.xlu1 %516  ;;  %v572_v4 = vpop.permute.xlu0 %571  ;;  %v338_v32 = vmul.f32 %v2749_v57, %v279_v27 }
  0xcf   : > { %v757_v10 = vmul.f32 %v517_v1, %v400_v53  ;;  %v3041_v11 = vmul.f32 %v572_v4, %v411_v28  ;;  %v1085_v23 = vsel %vm1082_vm2, %v1083_v9, %v1084_v51  ;;  %v412_v6 = vmax.f32 %v361_v56, 0.0 }
  0xd0   : > { %2398 = vmatmul.mubr.msk.f32.gmra.mrb[4].mxu0 %vm808_vm1, %v3024_v58 }
  0xd1   : > { %v1087_v20 = vrot.slane %v757_v10, 1  ;;  %2331 = vmatmul.mubr.msk.f32.gmra.mrb[6].mxu1 %vm808_vm1, %v3041_v11  ;;  %2400 = vmatprep.mubr.msk.f32.mxu0 %vm808_vm1, %v3041_v11 }
  0xd2   : > { %v537_v24 = vpop.permute.xlu1 %536  ;;  %v527_v25 = vpop.permute.xlu0 %526  ;;  %2335 = vmatprep.mubr.msk.f32.mxu1 %vm808_vm1, %v1085_v23  ;;  %v277_v23 = vld [vmem:[%s2743_s17 + $0x1f0] sm:$0xff] }
  0xd3   : > { %v3058_v35 = vsel %vm1082_vm2, %v1086_v19, %v1087_v20  ;;  %v761_v36 = vmul.f32 %v537_v24, %v404_v0  ;;  %v759_v39 = vmul.f32 %v527_v25, %v402_v5 }
  0xd5   : > { %v1093_v49 = vrot.slane %v761_v36, 1  ;;  %v1090_v50 = vrot.slane %v759_v39, 1  ;;  %2336 = vmatmul.mubr.msk.f32.vlgmr.msra.gmra.mrb[0].mxu1 %vm808_vm1, %v3058_v35  ;;  %v339_v39 = vmul.f32 %v2749_v57, %v280_v22 }
  0xd6   : > { %v582_v52 = vpop.permute.xlu1 %581  ;;  %v547_v53 = vpop.permute.xlu0 %546  ;;  %2348 = vmatpush3.msk.msra.mxu1 %vm833_vm0, %v2951_v31  ;;  %v1095_v31 = vrot.slane %v3001_v38, 1  ;;  %v315_v38 = vmul.f32 %v2749_v57, %v256_v42 }
  0xd7   : > { %v3067_v28 = vmul.f32 %v582_v52, %v413_v26  ;;  %v763_v16 = vmul.f32 %v547_v53, %v406_v41  ;;  %v3070_v18 = vsel %vm1082_vm2, %v1089_v44, %v1090_v50  ;;  %v3073_v59 = vsel %vm1082_vm2, %v1092_v43, %v1093_v49  ;;  %2431 = vmatprep.subr.msk.mxu1 %vm833_vm0, %v2601_v14 }
  0xd8   : > { %2338 = vmatprep.mubr.msk.f32.mxu1 %vm808_vm1, %v3070_v18  ;;  %v372_v58 = vadd.f32 %v2758_v62, %v315_v38  ;;  %v395_v43 = vadd.f32 %v2758_v62, %v338_v32 }
  0xd9   : > { %v1096_v63 = vrot.slane %v763_v16, 1  ;;  %2339 = vmatmul.mubr.msk.f32.gmra.mrb[2].mxu1 %vm808_vm1, %v3073_v59  ;;  %2401 = vmatmul.mubr.msk.f32.gmra.mrb[6].mxu0 %vm808_vm1, %v3067_v28 }
  0xda   : > { %v567_v51 = vpop.permute.xlu1 %566  ;;  %v557_v0 = vpop.permute.xlu0 %556  ;;  %2405 = vmatprep.mubr.msk.f32.mxu0 %vm808_vm1, %v2775_v21  ;;  %v423_v20 = vmax.f32 %v372_v58, 0.0  ;;  %v446_v44 = vmax.f32 %v395_v43, 0.0 }
  0xdb   : > { %v767_v1 = vmul.f32 %v567_v51, %v410_v54  ;;  %v765_v4 = vmul.f32 %v557_v0, %v408_v55  ;;  %v3088_v5 = vsel %vm1082_vm2, %v1095_v31, %v1096_v63 }
  0xdc   : > { %2341 = vmatprep.mubr.msk.f32.mxu1 %vm808_vm1, %v3088_v5 }
  0xdd   : > { %v1102_v9 = vrot.slane %v767_v1, 1  ;;  %v1099_v10 = vrot.slane %v765_v4, 1  ;;  %2406 = vmatmul.mubr.msk.f32.vlgmr.msra.gmra.mrb[0].mxu0 %vm808_vm1, %v2808_v48  ;;  %v1104_v48 = vrot.slane %v3041_v11, 1  ;;  %v336_v11 = vmul.f32 %v2749_v57, %v277_v23 }
  0xde   : > { %v577_v21 = vpop.permute.xlu0 %576  ;;  %2408 = vmatprep.mubr.msk.f32.mxu0 %vm808_vm1, %v2825_v61  ;;  %2418 = vmatpush3.msk.msra.mxu0 %vm833_vm0, %v3011_v30  ;;  %v247_v61 = vld [vmem:[%s2743_s17 + $0x88] sm:$0x1]  ;;  %v632_v24 = vpop.permute.xlu1 %631 }
  0xdf   : > { %v769_v13 = vmul.f32 %v577_v21, %v412_v6  ;;  %v1100_v15 = vsel %vm1082_vm2, %v1098_v7, %v1099_v10  ;;  %v1103_v37 = vsel %vm1082_vm2, %v1101_v8, %v1102_v9  ;;  %v780_v25 = vmul.f32 %v632_v24, %v423_v20 }
  0xe0   : > { %2342 = vmatmul.mubr.msk.f32.gmra.mrb[4].mxu1 %vm808_vm1, %v1100_v15 }
  0xe1   : > { %v1105_v19 = vrot.slane %v769_v13, 1  ;;  %2344 = vmatprep.mubr.msk.f32.mxu1 %vm808_vm1, %v1103_v37  ;;  %2409 = vmatmul.mubr.msk.f32.gmra.mrb[2].mxu0 %vm808_vm1, %v2859_v47  ;;  %v306_v47 = vmul.f32 %v2749_v57, %v247_v61 }
  0xe2   : > { %2411 = vmatprep.mubr.msk.f32.mxu0 %vm808_vm1, %v2857_v46  ;;  %v278_v46 = vld [vmem:[%s2743_s17 + $0x200] sm:$0xff]  ;;  %v737_v26 = vpop.permute.xlu0 %736 }
  0xe3   : > { %v1106_v30 = vsel %vm1082_vm2, %v1104_v48, %v1105_v19 }
  0xe4   : > { %2345 = vmatmul.mubr.msk.f32.gmra.mrb[6].mxu1 %vm808_vm1, %v1106_v30 }
  0xe5   : > { %2349 = vmatprep.mubr.msk.f32.mxu1 %vm808_vm1, %v2829_v2  ;;  %2412 = vmatmul.mubr.msk.f32.gmra.mrb[4].mxu0 %vm808_vm1, %v2903_v34  ;;  %v363_v2 = vadd.f32 %v2758_v62, %v306_v47  ;;  %v337_v34 = vmul.f32 %v2749_v57, %v278_v46 }
  0xe6   : > { %2414 = vmatprep.mubr.msk.f32.mxu0 %vm808_vm1, %v2901_v33  ;;  %v393_v33 = vadd.f32 %v2758_v62, %v336_v11  ;;  %v587_v36 = vpop.permute.xlu0 %586 }
  0xe8   : > { %2350 = vmatmul.mubr.msk.f32.vlgmr.msra.gmra.mrb[0].mxu1 %vm808_vm1, %v2845_v29  ;;  %v414_v29 = vmax.f32 %v363_v2, 0.0  ;;  %v444_v41 = vmax.f32 %v393_v33, 0.0 }
  0xe9   : > { %2432 = vmatpush3.msk.msra.mxu1 %vm833_vm0, %v2601_v14  ;;  %2352 = vmatprep.mubr.msk.f32.mxu1 %vm808_vm1, %v2880_v60  ;;  %v742_v14 = vpop.permute.xlu1 %741  ;;  %v394_v60 = vadd.f32 %v2758_v62, %v337_v34 }
  0xea   : > { %2415 = vmatmul.mubr.msk.f32.gmra.mrb[6].mxu0 %vm808_vm1, %v780_v25  ;;  %v801_v57 = vmul.f32 %v737_v26, %v444_v41  ;;  %v752_v53 = vpop.permute.xlu0 %751 }
  0xeb   : > { %2419 = vmatprep.mubr.msk.f32.mxu0 %vm808_vm1, %v3058_v35  ;;  %v396_v35 = vadd.f32 %v2758_v62, %v339_v39  ;;  %v1934_v62 = vrot.slane %v3067_v28, 1 }
  0xec   : > { %2353 = vmatmul.mubr.msk.f32.gmra.mrb[2].mxu1 %vm808_vm1, %v2890_v12  ;;  %v771_v12 = vmul.f32 %v587_v36, %v414_v29 }
  0xed   : > { %2355 = vmatprep.mubr.msk.f32.mxu1 %vm808_vm1, %v2916_v45  ;;  %v445_v45 = vmax.f32 %v394_v60, 0.0  ;;  %v747_v49 = vpop.permute.xlu1 %746  ;;  %v447_v50 = vmax.f32 %v396_v35, 0.0 }
  0xee   : > { %2420 = vmatmul.mubr.msk.f32.vlgmr.msra.gmra.mrb[0].mxu0 %vm808_vm1, %v3070_v18  ;;  %v803_v52 = vmul.f32 %v747_v49, %v446_v44 }
  0xef   : > { %2422 = vmatprep.mubr.msk.f32.mxu0 %vm808_vm1, %v3073_v59  ;;  %v804_v54 = vmul.f32 %v752_v53, %v447_v50 }
  0xf0   : > { %2356 = vmatmul.mubr.msk.f32.gmra.mrb[4].mxu1 %vm808_vm1, %v2926_v3  ;;  %v1935_v3 = vrot.slane %v771_v12, 1 }
  0xf1   : > { %2358 = vmatprep.mubr.msk.f32.mxu1 %vm808_vm1, %v2957_v40  ;;  %v802_v40 = vmul.f32 %v742_v14, %v445_v45 }
  0xf2   : > { %2423 = vmatmul.mubr.msk.f32.gmra.mrb[2].mxu0 %vm808_vm1, %v3088_v5 }
  0xf3   : > { %2425 = vmatprep.mubr.msk.f32.mxu0 %vm808_vm1, %v1100_v15 }
  0xf4   : > { %2359 = vmatmul.mubr.msk.f32.gmra.mrb[6].mxu1 %vm808_vm1, %v2971_v17  ;;  %v1936_v17 = vsel %vm1082_vm2, %v1934_v62, %v1935_v3 }
  0xf5   : > { %2369 = vmatprep.mubr.msk.f32.mxu1 %vm808_vm1, %v801_v57 }
  0xf6   : > { %2426 = vmatmul.mubr.msk.f32.gmra.mrb[4].mxu0 %vm808_vm1, %v1103_v37 }
  0xf7   : > { %2428 = vmatprep.mubr.msk.f32.mxu0 %vm808_vm1, %v1106_v30 }
  0xf8   : > { %2370 = vmatmul.mubr.msk.f32.vlgmr.msra.gmra.mrb[4].mxu1 %vm808_vm1, %v802_v40 }
  0xf9   : > { %2372 = vmatprep.mubr.msk.f32.mxu1 %vm808_vm1, %v803_v52 }
  0xfa   : > { %2429 = vmatmul.mubr.msk.f32.gmra.mrb[6].mxu0 %vm808_vm1, %v1936_v17 }
  0xfc   : > { %2373 = vmatmul.mubr.msk.f32.gmra.mrb[6].mxu1 %vm808_vm1, %v804_v54 }
 0x1bb   : > { %v2351_v55 = vpop.f32.mrb[0].mxu1 }
 0x1bc   : > { %v1336_v56 = vpop.f32.mrb[1].mxu1 }
 0x1bf   : > { %v2354_v28 = vpop.f32.mrb[2].mxu1 }
 0x1c0   : > { %v1346_v16 = vpop.f32.mrb[3].mxu1 }
 0x1c1   : > { %v2421_v18 = vpop.f32.mrb[0].mxu0 }
 0x1c2   : > { %v2433_v59 = vadd.f32 %v2421_v18, %v2351_v55  ;;  %v2010_v31 = vpop.f32.mrb[1].mxu0 }
 0x1c3   : > { %v2434_v63 = vadd.f32 %v2010_v31, %v1336_v56 }
 0x1c4   : > { %2059 = vst.msk [vmem:[%s229_s12 + $0x8] sm:$0xff] %vm2057_vm3, %v2433_v59 }
 0x1c5   : > { %2058 = vst.msk [vmem:[%s229_s12] sm:$0xff] %vm2057_vm3, %v2434_v63  ;;  %v2424_v42 = vpop.f32.mrb[2].mxu0 }
 0x1c6   : > { %v2435_v51 = vadd.f32 %v2424_v42, %v2354_v28  ;;  %v2020_v0 = vpop.f32.mrb[3].mxu0 }
 0x1c7   : > { %v2436_v1 = vadd.f32 %v2020_v0, %v1346_v16 }
 0x1c8   : > { %2061 = vst.msk [vmem:[%s229_s12 + $0x18] sm:$0xff] %vm2057_vm3, %v2435_v51 }
 0x1c9   : > { %2060 = vst.msk [vmem:[%s229_s12 + $0x10] sm:$0xff] %vm2057_vm3, %v2436_v1  ;;  %v2427_v4 = vpop.f32.mrb[4].mxu0 }
 0x1ca   : > { %v2030_v5 = vpop.f32.mrb[5].mxu0 }
 0x1cb   : > { %v2371_v6 = vpop.f32.mrb[4].mxu1 }
 0x1cc   : > { %v2437_v38 = vadd.f32 %v2427_v4, %v2371_v6  ;;  %v1498_v7 = vpop.f32.mrb[5].mxu1 }
 0x1cd   : > { %v2438_v8 = vadd.f32 %v2030_v5, %v1498_v7  ;;  %v2430_v9 = vpop.f32.mrb[6].mxu0 }
 0x1ce   : > { %2063 = vst.msk [vmem:[%s229_s12 + $0x28] sm:$0xff] %vm2057_vm3, %v2437_v38  ;;  %v2040_v10 = vpop.f32.mrb[7].mxu0 }
 0x1cf   : > { %2062 = vst.msk [vmem:[%s229_s12 + $0x20] sm:$0xff] %vm2057_vm3, %v2438_v8  ;;  %v2374_v21 = vpop.f32.mrb[6].mxu1 }
 0x1d0   : > { %v2439_v13 = vadd.f32 %v2430_v9, %v2374_v21  ;;  %v1508_v15 = vpop.f32.mrb[7].mxu1 }
 0x1d1   : > { %v2440_v37 = vadd.f32 %v2040_v10, %v1508_v15 }
 0x1d2   : > { %2065 = vst.msk [vmem:[%s229_s12 + $0x38] sm:$0xff] %vm2057_vm3, %v2439_v13 }
 0x1d3   : > { %2064 = vst.msk [vmem:[%s229_s12 + $0x30] sm:$0xff] %vm2057_vm3, %v2440_v37 }
 0x1d4 PF: > { %s15_s18 = sadd.s32 1, %s2515_s18  }
 0x1d5   : > { %p12_p5 = scmp.ge.s32.totalorder %s15_s18, 4  }
 0x1d7   :  { %14 = sbr.rel (!%p12_p5) target bundleno = 1 (0x1), region = 78 }

</bundles_post_ra>
